<compile_context>
chip_gen: v7x
topology: tpu7x:2x2x1
jax: 0.10.0
libtpu: 0.0.40
codegen_flags: <defaults>
</compile_context>

<pallas_src>
import numpy as np
import jax
import jax.numpy as jnp
from jax.experimental import pallas as pl
from jax.experimental.pallas import tpu as pltpu

NN_SCALE = 1999853.335557038
LN_EPS = 1e-5
LEAKY_SLOPE = 0.2
NEG_INF = -1e30


def _elu(x):
    return jnp.where(x > 0, x, jnp.exp(jnp.minimum(x, 0.0)) - 1.0)


def _layernorm(x, gamma, beta):
    mean = jnp.mean(x, axis=-1, keepdims=True)
    var = jnp.mean((x - mean) ** 2, axis=-1, keepdims=True)
    return (x - mean) * jax.lax.rsqrt(var + LN_EPS) * gamma + beta


# -----------------------------------------------------------------------------
# Pallas kernel
# -----------------------------------------------------------------------------
def make_kernel(layer_cfgs, num_final, N, B_TILE):
    def kernel(q_ref, x_ref, bias_ref, *rest):
        out_ref = rest[-1]
        it = iter(rest[:-1])

        tile = pl.program_id(0)

        # ---- hoisted per-grid-step work -------------------------------------
        x = x_ref[...]                                     # (BT, N, F)
        xflat = x.reshape(B_TILE * N, x.shape[-1])         # (BT*N, F)

        W_init = next(it)
        b_init = next(it)
        h = _elu(jnp.dot(xflat, W_init[...],
                         preferred_element_type=jnp.float32) + b_init[...])

        for cfg in layer_cfgs:
            H, dh = cfg["num_heads"], cfg["dim_hidden"]
            Wp_flat = next(it)    # (D, H*dh)   head-fused projection
            Asrc = next(it)       # (H*dh, H)   block-diag source score matrix
            AdstT = next(it)      # (H, H*dh)   block-diag dest score matrix^T
            Wcomb = next(it)      # (H*dh, dlin) Wo@Wlin folded, head-stacked
            blin = next(it)       # (1, dlin)
            gamma = next(it)      # (1, dlin)
            beta = next(it)       # (1, dlin)

            # one projection dot + one src-score dot for ALL heads & rows
            hh = jnp.dot(h, Wp_flat[...],
                         preferred_element_type=jnp.float32)   # (BT*N, H*dh)
            s_src = jnp.dot(hh, Asrc[...],
                            preferred_element_type=jnp.float32)  # (BT*N, H)
            # destination scores directly in ROW layout (H, BT*N): contract
            # A_dst^T with hh over the feature axis -> no in-kernel transpose.
            s_dstT = jax.lax.dot_general(
                AdstT[...], hh,
                dimension_numbers=(((1,), (1,)), ((), ())),
                preferred_element_type=jnp.float32)             # (H, BT*N)

            rows = []
            for b in range(B_TILE):
                r0 = b * N
                bias_b = bias_ref[b]                             # (N, N)
                hh_b = hh[r0:r0 + N, :]                          # (N, H*dh)
                heads = []
                for hd in range(H):
                    raw = (s_src[r0:r0 + N, hd:hd + 1]           # (N, 1)
                           + s_dstT[hd:hd + 1, r0:r0 + N])       # (1, N) -> (N, N)
                    e = jnp.where(raw > 0, raw, LEAKY_SLOPE * raw) + bias_b
                    e = e - jnp.max(e, axis=-1, keepdims=True)
                    p = jnp.exp(e)
                    p = p / jnp.sum(p, axis=-1, keepdims=True)
                    heads.append(
                        jnp.dot(p, hh_b[:, hd * dh:(hd + 1) * dh],
                                preferred_element_type=jnp.float32))  # (N, dh)
                rows.append(jnp.concatenate(heads, axis=1))      # (N, H*dh)
            agg = jnp.concatenate(rows, axis=0)                  # (BT*N, H*dh)

            # concat-of-heads @ (Wo;Wlin)  ==  agg @ Wcomb  (folded on host)
            acc = jnp.dot(agg, Wcomb[...], preferred_element_type=jnp.float32)
            out = _elu(acc + blin[...]) + h          # AttnModule lin+ELU, residual
            h = _layernorm(out, gamma[...], beta[...])

        # ---- gather the query node's row per batch element ------------------
        # one fused (BT, BT*N) @ (BT*N, dlin) one-hot matmul for the tile
        col_ids = jax.lax.broadcasted_iota(jnp.int32, (1, B_TILE * N), 1)
        oh_rows = []
        for b in range(B_TILE):
            q_b = q_ref[tile * B_TILE + b]
            oh_rows.append((col_ids == (q_b + b * N)).astype(jnp.float32))
        onehot = jnp.concatenate(oh_rows, axis=0)                # (BT, BT*N)
        vnf = jnp.dot(onehot, h, preferred_element_type=jnp.float32)

        for _ in range(num_final):
            Wf = next(it)
            bf = next(it)
            vnf = _elu(jnp.dot(vnf, Wf[...],
                               preferred_element_type=jnp.float32) + bf[...])

        out_ref[0] = vnf * NN_SCALE

    return kernel


# -----------------------------------------------------------------------------
# host glue: fold / fuse the per-head parameters for the kernel
# -----------------------------------------------------------------------------
def prepare_kernel_params(params, layer_cfgs, num_final):
    it = iter(params)
    out = [next(it), next(it)]                    # W_init, b_init
    for cfg in layer_cfgs:
        H, dh, dlin = cfg["num_heads"], cfg["dim_hidden"], cfg["dim_linear"]
        Wp = next(it)       # (H, D, dh)
        asrc = next(it)     # (H, dh, 1)
        adst = next(it)     # (H, dh, 1)
        Wo = next(it)       # (H, dh, do)
        Wlin = next(it)     # (H, do, dlin)
        blin = next(it)
        gamma = next(it)
        beta = next(it)
        D = Wp.shape[1]
        K = H * dh
        # head-fused projection:  column (h*dh + d) = Wp[h, :, d]
        Wp_flat = jnp.transpose(Wp, (1, 0, 2)).reshape(D, K)
        # block-diagonal score matrices (built with numpy on host)
        Asrc = np.zeros((K, H), np.float32)
        AdstT = np.zeros((H, K), np.float32)
        asrc_np = np.asarray(asrc, np.float32)
        adst_np = np.asarray(adst, np.float32)
        for hd in range(H):
            Asrc[hd * dh:(hd + 1) * dh, hd] = asrc_np[hd, :, 0]
            AdstT[hd, hd * dh:(hd + 1) * dh] = adst_np[hd, :, 0]
        # pre-fold Wo[h] @ Wlin[h]  ->  (H*dh, dlin)
        Wcomb = jnp.einsum("hdo,hol->hdl", Wo, Wlin).reshape(K, dlin)
        out += [Wp_flat, jnp.asarray(Asrc), jnp.asarray(AdstT),
                Wcomb, blin, gamma, beta]
    for _ in range(num_final):
        out += [next(it), next(it)]
    return out


def stacked_gat_forward(query_idxs, x, dense_mask, params, *,
                        layer_cfgs, num_final, dim_final, b_tile=2):
    B, N, dim_in = x.shape
    BT = max(1, min(b_tile, B))
    B_pad = ((B + BT - 1) // BT) * BT
    if B_pad != B:
        pad = B_pad - B
        x = jnp.pad(x, ((0, pad), (0, 0), (0, 0)))
        dense_mask = jnp.pad(dense_mask, ((0, pad), (0, 0), (0, 0)))
        query_idxs = jnp.pad(query_idxs, (0, pad))
    n_tiles = B_pad // BT

    # additive attention-mask bias precomputed ONCE in plain-JAX glue
    attn_bias = jnp.where(dense_mask > 0, 0.0, NEG_INF).astype(jnp.float32)

    kparams = prepare_kernel_params(params, layer_cfgs, num_final)
    kernel = make_kernel(layer_cfgs, num_final, N, BT)

    def full_spec(p):
        nd = p.ndim
        return pl.BlockSpec(p.shape, lambda t, q, _nd=nd: (0,) * _nd)

    in_specs = [
        pl.BlockSpec((BT, N, dim_in), lambda t, q: (t, 0, 0)),
        pl.BlockSpec((BT, N, N), lambda t, q: (t, 0, 0)),
    ] + [full_spec(p) for p in kparams]

    # 3-D output so the block's last two dims equal the full array dims
    out_spec = pl.BlockSpec((1, BT, dim_final), lambda t, q: (t, 0, 0))

    out = pl.pallas_call(
        kernel,
        out_shape=jax.ShapeDtypeStruct((n_tiles, BT, dim_final), jnp.float32),
        grid_spec=pltpu.PrefetchScalarGridSpec(
            num_scalar_prefetch=1,
            grid=(n_tiles,),
            in_specs=in_specs,
            out_specs=out_spec,
        ),
        compiler_params=pltpu.CompilerParams(
            dimension_semantics=("parallel",)),
    )(query_idxs.astype(jnp.int32), x, attn_bias, *kparams)
    return out.reshape(B_pad, dim_final)[:B]


# -----------------------------------------------------------------------------
# deterministic parameter init + pure-JAX reference
# -----------------------------------------------------------------------------
def init_params(key, dim_in, dim_initial, layer_cfgs, final_dims):
    k = key

    def nxt():
        nonlocal k
        k, sub = jax.random.split(k)
        return sub

    params = []
    params.append(jax.random.normal(nxt(), (dim_in, dim_initial), jnp.float32) * 0.2)
    params.append(jax.random.normal(nxt(), (1, dim_initial), jnp.float32) * 0.1)
    for cfg in layer_cfgs:
        H, dh = cfg["num_heads"], cfg["dim_hidden"]
        do, dlin, din = cfg["dim_out"], cfg["dim_linear"], cfg["dim_in"]
        params.append(jax.random.normal(nxt(), (H, din, dh), jnp.float32) * 0.2)
        params.append(jax.random.normal(nxt(), (H, dh, 1), jnp.float32) * 0.2)
        params.append(jax.random.normal(nxt(), (H, dh, 1), jnp.float32) * 0.2)
        params.append(jax.random.normal(nxt(), (H, dh, do), jnp.float32) * 0.2)
        params.append(jax.random.normal(nxt(), (H, do, dlin), jnp.float32) * 0.2)
        params.append(jax.random.normal(nxt(), (1, dlin), jnp.float32) * 0.1)
        params.append(jnp.ones((1, dlin), jnp.float32))   # LayerNorm gamma
        params.append(jnp.zeros((1, dlin), jnp.float32))  # LayerNorm beta
    for di, do_ in zip(final_dims[:-1], final_dims[1:]):
        params.append(jax.random.normal(nxt(), (di, do_), jnp.float32) * 0.2)
        params.append(jax.random.normal(nxt(), (1, do_), jnp.float32) * 0.1)
    return params


def reference_forward(query_idxs, x, dense_mask, params,
                      num_layers, num_heads, num_final):
    it = iter(params)
    W_init, b_init = next(it), next(it)
    h = _elu(x @ W_init + b_init)                       # (B,N,D)
    for _ in range(num_layers):
        Wp, asrc, adst, Wo, Wlin, blin, gamma, beta = (next(it) for _ in range(8))
        acc = jnp.zeros(h.shape[:-1] + (blin.shape[-1],), jnp.float32)
        for hd in range(num_heads):
            hh = h @ Wp[hd]
            e = (hh @ asrc[hd]) + jnp.swapaxes(hh @ adst[hd], -1, -2)
            e = jnp.where(e > 0, e, LEAKY_SLOPE * e)
            e = jnp.where(dense_mask > 0, e, NEG_INF)
            e = e - jnp.max(e, axis=-1, keepdims=True)
            p = jnp.exp(e)
            p = p / jnp.sum(p, axis=-1, keepdims=True)
            head = (p @ hh) @ Wo[hd]
            acc = acc + head @ Wlin[hd]
        out = _elu(acc + blin) + h
        h = _layernorm(out, gamma, beta)
    vnf = jnp.take_along_axis(
        h, query_idxs[:, None, None].astype(jnp.int32), axis=1)[:, 0, :]
    for _ in range(num_final):
        Wf, bf = next(it), next(it)
        vnf = _elu(vnf @ Wf + bf)
    return vnf * NN_SCALE


# -----------------------------------------------------------------------------
if __name__ == "__main__":
    key = jax.random.PRNGKey(0)
    B, N, MAX_DEG = 4, 8, 4
    DIM_IN, DIM_INITIAL = 8, 32
    NUM_HEADS, DIM_HIDDEN, DIM_HEAD_OUT, DIM_LINEAR = 4, 16, 8, 32
    NUM_LAYERS = 2
    DIM_HIDDENS = [16]
    DIM_OUT = 8
    final_dims = [DIM_LINEAR] + DIM_HIDDENS + [DIM_OUT]   # [32, 16, 8]
    NUM_FINAL = len(final_dims) - 1

    layer_cfgs = [dict(num_heads=NUM_HEADS, dim_hidden=DIM_HIDDEN,
                       dim_out=DIM_HEAD_OUT, dim_linear=DIM_LINEAR,
                       dim_in=DIM_INITIAL) for _ in range(NUM_LAYERS)]

    k1, k2, k3, k4, kp = jax.random.split(key, 5)
    x = jax.random.normal(k1, (B, N, DIM_IN), jnp.float32)
    query_idxs = jax.random.randint(k2, (B,), 0, N, jnp.int32)
    adj = jax.random.randint(k3, (B, N, MAX_DEG), 0, N, jnp.int32)
    masks = (jax.random.uniform(k4, (B, N, MAX_DEG, 1)) > 0.3).astype(jnp.float32)
    # make slot 0 the (always valid) self edge so every row has a neighbour
    self_idx = jnp.broadcast_to(jnp.arange(N, dtype=jnp.int32)[None, :, None],
                                (B, N, 1))
    adj = jnp.concatenate([self_idx, adj[:, :, 1:]], axis=-1)
    masks = masks.at[:, :, 0, 0].set(1.0)

    # densify the neighbour-list adjacency into a (B, N, N) attention mask
    neigh_onehot = jax.nn.one_hot(adj, N, dtype=jnp.float32)     # (B,N,MAX_DEG,N)
    dense_mask = jnp.max(neigh_onehot * masks, axis=2)           # (B,N,N)

    params = init_params(kp, DIM_IN, DIM_INITIAL, layer_cfgs, final_dims)

    out = stacked_gat_forward(query_idxs, x, dense_mask, params,
                              layer_cfgs=layer_cfgs, num_final=NUM_FINAL,
                              dim_final=DIM_OUT, b_tile=2)
    out = jax.block_until_ready(out)

    ref = reference_forward(query_idxs, x, dense_mask, params,
                            NUM_LAYERS, NUM_HEADS, NUM_FINAL)
    np.testing.assert_allclose(np.asarray(out), np.asarray(ref),
                               rtol=5e-3, atol=1.0)
    print("KERNEL_OK")
</pallas_src>

<mosaic_0001>
module attributes {stable_mosaic.version = 11 : i64} {
  func.func @kernel(%arg0: i32, %arg1: memref<4xi32, #tpu.memory_space<smem>>, %arg2: memref<2x8x8xf32, #tpu.memory_space<vmem>>, %arg3: memref<2x8x8xf32, #tpu.memory_space<vmem>>, %arg4: memref<8x32xf32, #tpu.memory_space<vmem>>, %arg5: memref<1x32xf32, #tpu.memory_space<vmem>>, %arg6: memref<32x64xf32, #tpu.memory_space<vmem>>, %arg7: memref<64x4xf32, #tpu.memory_space<vmem>>, %arg8: memref<4x64xf32, #tpu.memory_space<vmem>>, %arg9: memref<64x32xf32, #tpu.memory_space<vmem>>, %arg10: memref<1x32xf32, #tpu.memory_space<vmem>>, %arg11: memref<1x32xf32, #tpu.memory_space<vmem>>, %arg12: memref<1x32xf32, #tpu.memory_space<vmem>>, %arg13: memref<32x64xf32, #tpu.memory_space<vmem>>, %arg14: memref<64x4xf32, #tpu.memory_space<vmem>>, %arg15: memref<4x64xf32, #tpu.memory_space<vmem>>, %arg16: memref<64x32xf32, #tpu.memory_space<vmem>>, %arg17: memref<1x32xf32, #tpu.memory_space<vmem>>, %arg18: memref<1x32xf32, #tpu.memory_space<vmem>>, %arg19: memref<1x32xf32, #tpu.memory_space<vmem>>, %arg20: memref<32x16xf32, #tpu.memory_space<vmem>>, %arg21: memref<1x16xf32, #tpu.memory_space<vmem>>, %arg22: memref<16x8xf32, #tpu.memory_space<vmem>>, %arg23: memref<1x8xf32, #tpu.memory_space<vmem>>, %arg24: memref<1x2x8xf32, #tpu.memory_space<vmem>>) attributes {dimension_semantics = [#tpu.dimension_semantics<parallel>], iteration_bounds = array<i64: 2>, scalar_prefetch = 1 : i64, scratch_operands = 0 : i64, tpu.core_type = #tpu.core_type<tc>, window_params = [{transform_indices = @transform_0, window_bounds = array<i64: 2, 8, 8>}, {transform_indices = @transform_1, window_bounds = array<i64: 2, 8, 8>}, {pipeline_mode = #tpu.pipeline_mode<synchronous>, transform_indices = @transform_2, window_bounds = array<i64: 8, 32>}, {pipeline_mode = #tpu.pipeline_mode<synchronous>, transform_indices = @transform_3, window_bounds = array<i64: 1, 32>}, {pipeline_mode = #tpu.pipeline_mode<synchronous>, transform_indices = @transform_4, window_bounds = array<i64: 32, 64>}, {pipeline_mode = #tpu.pipeline_mode<synchronous>, transform_indices = @transform_5, window_bounds = array<i64: 64, 4>}, {pipeline_mode = #tpu.pipeline_mode<synchronous>, transform_indices = @transform_6, window_bounds = array<i64: 4, 64>}, {pipeline_mode = #tpu.pipeline_mode<synchronous>, transform_indices = @transform_7, window_bounds = array<i64: 64, 32>}, {pipeline_mode = #tpu.pipeline_mode<synchronous>, transform_indices = @transform_8, window_bounds = array<i64: 1, 32>}, {pipeline_mode = #tpu.pipeline_mode<synchronous>, transform_indices = @transform_9, window_bounds = array<i64: 1, 32>}, {pipeline_mode = #tpu.pipeline_mode<synchronous>, transform_indices = @transform_10, window_bounds = array<i64: 1, 32>}, {pipeline_mode = #tpu.pipeline_mode<synchronous>, transform_indices = @transform_11, window_bounds = array<i64: 32, 64>}, {pipeline_mode = #tpu.pipeline_mode<synchronous>, transform_indices = @transform_12, window_bounds = array<i64: 64, 4>}, {pipeline_mode = #tpu.pipeline_mode<synchronous>, transform_indices = @transform_13, window_bounds = array<i64: 4, 64>}, {pipeline_mode = #tpu.pipeline_mode<synchronous>, transform_indices = @transform_14, window_bounds = array<i64: 64, 32>}, {pipeline_mode = #tpu.pipeline_mode<synchronous>, transform_indices = @transform_15, window_bounds = array<i64: 1, 32>}, {pipeline_mode = #tpu.pipeline_mode<synchronous>, transform_indices = @transform_16, window_bounds = array<i64: 1, 32>}, {pipeline_mode = #tpu.pipeline_mode<synchronous>, transform_indices = @transform_17, window_bounds = array<i64: 1, 32>}, {pipeline_mode = #tpu.pipeline_mode<synchronous>, transform_indices = @transform_18, window_bounds = array<i64: 32, 16>}, {pipeline_mode = #tpu.pipeline_mode<synchronous>, transform_indices = @transform_19, window_bounds = array<i64: 1, 16>}, {pipeline_mode = #tpu.pipeline_mode<synchronous>, transform_indices = @transform_20, window_bounds = array<i64: 16, 8>}, {pipeline_mode = #tpu.pipeline_mode<synchronous>, transform_indices = @transform_21, window_bounds = array<i64: 1, 8>}, {transform_indices = @transform_22, window_bounds = array<i64: 1, 2, 8>}]} {
    %c0 = arith.constant 0 : index
    %c0_0 = arith.constant 0 : index
    %c0_1 = arith.constant 0 : index
    %0 = vector.load %arg2[%c0, %c0_0, %c0_1] : memref<2x8x8xf32, #tpu.memory_space<vmem>>, vector<2x8x8xf32>
    %1 = vector.shape_cast %0 : vector<2x8x8xf32> to vector<16x8xf32>
    %c0_2 = arith.constant 0 : index
    %c0_3 = arith.constant 0 : index
    %2 = vector.load %arg4[%c0_2, %c0_3] : memref<8x32xf32, #tpu.memory_space<vmem>>, vector<8x32xf32>
    %cst = arith.constant dense<0.000000e+00> : vector<16x32xf32>
    %3 = tpu.matmul %1, %2, %cst {dimension_numbers = #tpu.dot_dimension_numbers<[1], [0], [0], [1], [0, 0, 1, 1], [], []>} : vector<16x8xf32>, vector<8x32xf32>, vector<16x32xf32> -> vector<16x32xf32>
    %c0_4 = arith.constant 0 : index
    %c0_5 = arith.constant 0 : index
    %4 = vector.load %arg5[%c0_4, %c0_5] : memref<1x32xf32, #tpu.memory_space<vmem>>, vector<1x32xf32>
    %5 = vector.broadcast %4 : vector<1x32xf32> to vector<16x32xf32>
    %6 = arith.addf %3, %5 : vector<16x32xf32>
    %cst_6 = arith.constant 0.000000e+00 : f32
    %7 = vector.broadcast %cst_6 : f32 to vector<16x32xf32>
    %8 = arith.cmpf ogt, %6, %7 : vector<16x32xf32>
    %cst_7 = arith.constant 0.000000e+00 : f32
    %9 = vector.broadcast %cst_7 : f32 to vector<16x32xf32>
    %10 = arith.minimumf %6, %9 : vector<16x32xf32>
    %11 = math.exp %10 : vector<16x32xf32>
    %cst_8 = arith.constant 1.000000e+00 : f32
    %12 = vector.broadcast %cst_8 : f32 to vector<16x32xf32>
    %13 = arith.subf %11, %12 : vector<16x32xf32>
    %14 = arith.select %8, %6, %13 : vector<16x32xi1>, vector<16x32xf32>
    %c0_9 = arith.constant 0 : index
    %c0_10 = arith.constant 0 : index
    %15 = vector.load %arg6[%c0_9, %c0_10] : memref<32x64xf32, #tpu.memory_space<vmem>>, vector<32x64xf32>
    %cst_11 = arith.constant dense<0.000000e+00> : vector<16x64xf32>
    %16 = tpu.matmul %14, %15, %cst_11 {dimension_numbers = #tpu.dot_dimension_numbers<[1], [0], [0], [1], [0, 0, 1, 1], [], []>} : vector<16x32xf32>, vector<32x64xf32>, vector<16x64xf32> -> vector<16x64xf32>
    %c0_12 = arith.constant 0 : index
    %c0_13 = arith.constant 0 : index
    %17 = vector.load %arg7[%c0_12, %c0_13] : memref<64x4xf32, #tpu.memory_space<vmem>>, vector<64x4xf32>
    %cst_14 = arith.constant dense<0.000000e+00> : vector<16x4xf32>
    %18 = tpu.matmul %16, %17, %cst_14 {dimension_numbers = #tpu.dot_dimension_numbers<[1], [0], [0], [1], [0, 0, 1, 1], [], []>} : vector<16x64xf32>, vector<64x4xf32>, vector<16x4xf32> -> vector<16x4xf32>
    %c0_15 = arith.constant 0 : index
    %c0_16 = arith.constant 0 : index
    %19 = vector.load %arg8[%c0_15, %c0_16] : memref<4x64xf32, #tpu.memory_space<vmem>>, vector<4x64xf32>
    %cst_17 = arith.constant dense<0.000000e+00> : vector<4x16xf32>
    %20 = tpu.matmul %19, %16, %cst_17 {dimension_numbers = #tpu.dot_dimension_numbers<[1], [1], [0], [0], [0, 0, 1, 0], [], []>} : vector<4x64xf32>, vector<16x64xf32>, vector<4x16xf32> -> vector<4x16xf32>
    %c0_18 = arith.constant 0 : index
    %c0_19 = arith.constant 0 : index
    %c0_20 = arith.constant 0 : index
    %21 = vector.load %arg3[%c0_18, %c0_19, %c0_20] : memref<2x8x8xf32, #tpu.memory_space<vmem>>, vector<1x8x8xf32>
    %22 = vector.shape_cast %21 : vector<1x8x8xf32> to vector<8x8xf32>
    %23 = vector.extract_strided_slice %16 {offsets = [0, 0], sizes = [8, 64], strides = [1, 1]} : vector<16x64xf32> to vector<8x64xf32>
    %24 = vector.extract_strided_slice %18 {offsets = [0, 0], sizes = [8, 1], strides = [1, 1]} : vector<16x4xf32> to vector<8x1xf32>
    %25 = vector.extract_strided_slice %20 {offsets = [0, 0], sizes = [1, 8], strides = [1, 1]} : vector<4x16xf32> to vector<1x8xf32>
    %26 = vector.broadcast %24 : vector<8x1xf32> to vector<8x8xf32>
    %27 = vector.broadcast %25 : vector<1x8xf32> to vector<8x8xf32>
    %28 = arith.addf %26, %27 : vector<8x8xf32>
    %cst_21 = arith.constant 0.000000e+00 : f32
    %29 = vector.broadcast %cst_21 : f32 to vector<8x8xf32>
    %30 = arith.cmpf ogt, %28, %29 : vector<8x8xf32>
    %cst_22 = arith.constant 2.000000e-01 : f32
    %31 = vector.broadcast %cst_22 : f32 to vector<8x8xf32>
    %32 = arith.mulf %31, %28 : vector<8x8xf32>
    %33 = arith.select %30, %28, %32 : vector<8x8xi1>, vector<8x8xf32>
    %34 = arith.addf %33, %22 : vector<8x8xf32>
    %cst_23 = arith.constant dense<0xFF800000> : vector<8xf32>
    %35 = vector.multi_reduction <maximumf>, %34, %cst_23 [1] : vector<8x8xf32> to vector<8xf32>
    %36 = vector.shape_cast %35 : vector<8xf32> to vector<8x1xf32>
    %37 = vector.broadcast %36 : vector<8x1xf32> to vector<8x8xf32>
    %38 = arith.subf %34, %37 : vector<8x8xf32>
    %39 = math.exp %38 : vector<8x8xf32>
    %cst_24 = arith.constant dense<0.000000e+00> : vector<8xf32>
    %40 = vector.multi_reduction <add>, %39, %cst_24 [1] : vector<8x8xf32> to vector<8xf32>
    %41 = vector.shape_cast %40 : vector<8xf32> to vector<8x1xf32>
    %42 = vector.broadcast %41 : vector<8x1xf32> to vector<8x8xf32>
    %43 = arith.divf %39, %42 : vector<8x8xf32>
    %44 = vector.extract_strided_slice %23 {offsets = [0, 0], sizes = [8, 16], strides = [1, 1]} : vector<8x64xf32> to vector<8x16xf32>
    %cst_25 = arith.constant dense<0.000000e+00> : vector<8x16xf32>
    %45 = tpu.matmul %43, %44, %cst_25 {dimension_numbers = #tpu.dot_dimension_numbers<[1], [0], [0], [1], [0, 0, 1, 1], [], []>} : vector<8x8xf32>, vector<8x16xf32>, vector<8x16xf32> -> vector<8x16xf32>
    %46 = vector.extract_strided_slice %18 {offsets = [0, 1], sizes = [8, 1], strides = [1, 1]} : vector<16x4xf32> to vector<8x1xf32>
    %47 = vector.extract_strided_slice %20 {offsets = [1, 0], sizes = [1, 8], strides = [1, 1]} : vector<4x16xf32> to vector<1x8xf32>
    %48 = vector.broadcast %46 : vector<8x1xf32> to vector<8x8xf32>
    %49 = vector.broadcast %47 : vector<1x8xf32> to vector<8x8xf32>
    %50 = arith.addf %48, %49 : vector<8x8xf32>
    %cst_26 = arith.constant 0.000000e+00 : f32
    %51 = vector.broadcast %cst_26 : f32 to vector<8x8xf32>
    %52 = arith.cmpf ogt, %50, %51 : vector<8x8xf32>
    %cst_27 = arith.constant 2.000000e-01 : f32
    %53 = vector.broadcast %cst_27 : f32 to vector<8x8xf32>
    %54 = arith.mulf %53, %50 : vector<8x8xf32>
    %55 = arith.select %52, %50, %54 : vector<8x8xi1>, vector<8x8xf32>
    %56 = arith.addf %55, %22 : vector<8x8xf32>
    %cst_28 = arith.constant dense<0xFF800000> : vector<8xf32>
    %57 = vector.multi_reduction <maximumf>, %56, %cst_28 [1] : vector<8x8xf32> to vector<8xf32>
    %58 = vector.shape_cast %57 : vector<8xf32> to vector<8x1xf32>
    %59 = vector.broadcast %58 : vector<8x1xf32> to vector<8x8xf32>
    %60 = arith.subf %56, %59 : vector<8x8xf32>
    %61 = math.exp %60 : vector<8x8xf32>
    %cst_29 = arith.constant dense<0.000000e+00> : vector<8xf32>
    %62 = vector.multi_reduction <add>, %61, %cst_29 [1] : vector<8x8xf32> to vector<8xf32>
    %63 = vector.shape_cast %62 : vector<8xf32> to vector<8x1xf32>
    %64 = vector.broadcast %63 : vector<8x1xf32> to vector<8x8xf32>
    %65 = arith.divf %61, %64 : vector<8x8xf32>
    %66 = vector.extract_strided_slice %23 {offsets = [0, 16], sizes = [8, 16], strides = [1, 1]} : vector<8x64xf32> to vector<8x16xf32>
    %cst_30 = arith.constant dense<0.000000e+00> : vector<8x16xf32>
    %67 = tpu.matmul %65, %66, %cst_30 {dimension_numbers = #tpu.dot_dimension_numbers<[1], [0], [0], [1], [0, 0, 1, 1], [], []>} : vector<8x8xf32>, vector<8x16xf32>, vector<8x16xf32> -> vector<8x16xf32>
    %68 = vector.extract_strided_slice %18 {offsets = [0, 2], sizes = [8, 1], strides = [1, 1]} : vector<16x4xf32> to vector<8x1xf32>
    %69 = vector.extract_strided_slice %20 {offsets = [2, 0], sizes = [1, 8], strides = [1, 1]} : vector<4x16xf32> to vector<1x8xf32>
    %70 = vector.broadcast %68 : vector<8x1xf32> to vector<8x8xf32>
    %71 = vector.broadcast %69 : vector<1x8xf32> to vector<8x8xf32>
    %72 = arith.addf %70, %71 : vector<8x8xf32>
    %cst_31 = arith.constant 0.000000e+00 : f32
    %73 = vector.broadcast %cst_31 : f32 to vector<8x8xf32>
    %74 = arith.cmpf ogt, %72, %73 : vector<8x8xf32>
    %cst_32 = arith.constant 2.000000e-01 : f32
    %75 = vector.broadcast %cst_32 : f32 to vector<8x8xf32>
    %76 = arith.mulf %75, %72 : vector<8x8xf32>
    %77 = arith.select %74, %72, %76 : vector<8x8xi1>, vector<8x8xf32>
    %78 = arith.addf %77, %22 : vector<8x8xf32>
    %cst_33 = arith.constant dense<0xFF800000> : vector<8xf32>
    %79 = vector.multi_reduction <maximumf>, %78, %cst_33 [1] : vector<8x8xf32> to vector<8xf32>
    %80 = vector.shape_cast %79 : vector<8xf32> to vector<8x1xf32>
    %81 = vector.broadcast %80 : vector<8x1xf32> to vector<8x8xf32>
    %82 = arith.subf %78, %81 : vector<8x8xf32>
    %83 = math.exp %82 : vector<8x8xf32>
    %cst_34 = arith.constant dense<0.000000e+00> : vector<8xf32>
    %84 = vector.multi_reduction <add>, %83, %cst_34 [1] : vector<8x8xf32> to vector<8xf32>
    %85 = vector.shape_cast %84 : vector<8xf32> to vector<8x1xf32>
    %86 = vector.broadcast %85 : vector<8x1xf32> to vector<8x8xf32>
    %87 = arith.divf %83, %86 : vector<8x8xf32>
    %88 = vector.extract_strided_slice %23 {offsets = [0, 32], sizes = [8, 16], strides = [1, 1]} : vector<8x64xf32> to vector<8x16xf32>
    %cst_35 = arith.constant dense<0.000000e+00> : vector<8x16xf32>
    %89 = tpu.matmul %87, %88, %cst_35 {dimension_numbers = #tpu.dot_dimension_numbers<[1], [0], [0], [1], [0, 0, 1, 1], [], []>} : vector<8x8xf32>, vector<8x16xf32>, vector<8x16xf32> -> vector<8x16xf32>
    %90 = vector.extract_strided_slice %18 {offsets = [0, 3], sizes = [8, 1], strides = [1, 1]} : vector<16x4xf32> to vector<8x1xf32>
    %91 = vector.extract_strided_slice %20 {offsets = [3, 0], sizes = [1, 8], strides = [1, 1]} : vector<4x16xf32> to vector<1x8xf32>
    %92 = vector.broadcast %90 : vector<8x1xf32> to vector<8x8xf32>
    %93 = vector.broadcast %91 : vector<1x8xf32> to vector<8x8xf32>
    %94 = arith.addf %92, %93 : vector<8x8xf32>
    %cst_36 = arith.constant 0.000000e+00 : f32
    %95 = vector.broadcast %cst_36 : f32 to vector<8x8xf32>
    %96 = arith.cmpf ogt, %94, %95 : vector<8x8xf32>
    %cst_37 = arith.constant 2.000000e-01 : f32
    %97 = vector.broadcast %cst_37 : f32 to vector<8x8xf32>
    %98 = arith.mulf %97, %94 : vector<8x8xf32>
    %99 = arith.select %96, %94, %98 : vector<8x8xi1>, vector<8x8xf32>
    %100 = arith.addf %99, %22 : vector<8x8xf32>
    %cst_38 = arith.constant dense<0xFF800000> : vector<8xf32>
    %101 = vector.multi_reduction <maximumf>, %100, %cst_38 [1] : vector<8x8xf32> to vector<8xf32>
    %102 = vector.shape_cast %101 : vector<8xf32> to vector<8x1xf32>
    %103 = vector.broadcast %102 : vector<8x1xf32> to vector<8x8xf32>
    %104 = arith.subf %100, %103 : vector<8x8xf32>
    %105 = math.exp %104 : vector<8x8xf32>
    %cst_39 = arith.constant dense<0.000000e+00> : vector<8xf32>
    %106 = vector.multi_reduction <add>, %105, %cst_39 [1] : vector<8x8xf32> to vector<8xf32>
    %107 = vector.shape_cast %106 : vector<8xf32> to vector<8x1xf32>
    %108 = vector.broadcast %107 : vector<8x1xf32> to vector<8x8xf32>
    %109 = arith.divf %105, %108 : vector<8x8xf32>
    %110 = vector.extract_strided_slice %23 {offsets = [0, 48], sizes = [8, 16], strides = [1, 1]} : vector<8x64xf32> to vector<8x16xf32>
    %cst_40 = arith.constant dense<0.000000e+00> : vector<8x16xf32>
    %111 = tpu.matmul %109, %110, %cst_40 {dimension_numbers = #tpu.dot_dimension_numbers<[1], [0], [0], [1], [0, 0, 1, 1], [], []>} : vector<8x8xf32>, vector<8x16xf32>, vector<8x16xf32> -> vector<8x16xf32>
    %112 = tpu.concatenate %45, %67, %89, %111 in 1 : vector<8x16xf32>, vector<8x16xf32>, vector<8x16xf32>, vector<8x16xf32> -> vector<8x64xf32>
    %c1 = arith.constant 1 : index
    %c0_41 = arith.constant 0 : index
    %c0_42 = arith.constant 0 : index
    %113 = vector.load %arg3[%c1, %c0_41, %c0_42] : memref<2x8x8xf32, #tpu.memory_space<vmem>>, vector<1x8x8xf32>
    %114 = vector.shape_cast %113 : vector<1x8x8xf32> to vector<8x8xf32>
    %115 = vector.extract_strided_slice %16 {offsets = [8, 0], sizes = [8, 64], strides = [1, 1]} : vector<16x64xf32> to vector<8x64xf32>
    %116 = vector.extract_strided_slice %18 {offsets = [8, 0], sizes = [8, 1], strides = [1, 1]} : vector<16x4xf32> to vector<8x1xf32>
    %117 = vector.extract_strided_slice %20 {offsets = [0, 8], sizes = [1, 8], strides = [1, 1]} : vector<4x16xf32> to vector<1x8xf32>
    %118 = vector.broadcast %116 : vector<8x1xf32> to vector<8x8xf32>
    %119 = vector.broadcast %117 : vector<1x8xf32> to vector<8x8xf32>
    %120 = arith.addf %118, %119 : vector<8x8xf32>
    %cst_43 = arith.constant 0.000000e+00 : f32
    %121 = vector.broadcast %cst_43 : f32 to vector<8x8xf32>
    %122 = arith.cmpf ogt, %120, %121 : vector<8x8xf32>
    %cst_44 = arith.constant 2.000000e-01 : f32
    %123 = vector.broadcast %cst_44 : f32 to vector<8x8xf32>
    %124 = arith.mulf %123, %120 : vector<8x8xf32>
    %125 = arith.select %122, %120, %124 : vector<8x8xi1>, vector<8x8xf32>
    %126 = arith.addf %125, %114 : vector<8x8xf32>
    %cst_45 = arith.constant dense<0xFF800000> : vector<8xf32>
    %127 = vector.multi_reduction <maximumf>, %126, %cst_45 [1] : vector<8x8xf32> to vector<8xf32>
    %128 = vector.shape_cast %127 : vector<8xf32> to vector<8x1xf32>
    %129 = vector.broadcast %128 : vector<8x1xf32> to vector<8x8xf32>
    %130 = arith.subf %126, %129 : vector<8x8xf32>
    %131 = math.exp %130 : vector<8x8xf32>
    %cst_46 = arith.constant dense<0.000000e+00> : vector<8xf32>
    %132 = vector.multi_reduction <add>, %131, %cst_46 [1] : vector<8x8xf32> to vector<8xf32>
    %133 = vector.shape_cast %132 : vector<8xf32> to vector<8x1xf32>
    %134 = vector.broadcast %133 : vector<8x1xf32> to vector<8x8xf32>
    %135 = arith.divf %131, %134 : vector<8x8xf32>
    %136 = vector.extract_strided_slice %115 {offsets = [0, 0], sizes = [8, 16], strides = [1, 1]} : vector<8x64xf32> to vector<8x16xf32>
    %cst_47 = arith.constant dense<0.000000e+00> : vector<8x16xf32>
    %137 = tpu.matmul %135, %136, %cst_47 {dimension_numbers = #tpu.dot_dimension_numbers<[1], [0], [0], [1], [0, 0, 1, 1], [], []>} : vector<8x8xf32>, vector<8x16xf32>, vector<8x16xf32> -> vector<8x16xf32>
    %138 = vector.extract_strided_slice %18 {offsets = [8, 1], sizes = [8, 1], strides = [1, 1]} : vector<16x4xf32> to vector<8x1xf32>
    %139 = vector.extract_strided_slice %20 {offsets = [1, 8], sizes = [1, 8], strides = [1, 1]} : vector<4x16xf32> to vector<1x8xf32>
    %140 = vector.broadcast %138 : vector<8x1xf32> to vector<8x8xf32>
    %141 = vector.broadcast %139 : vector<1x8xf32> to vector<8x8xf32>
    %142 = arith.addf %140, %141 : vector<8x8xf32>
    %cst_48 = arith.constant 0.000000e+00 : f32
    %143 = vector.broadcast %cst_48 : f32 to vector<8x8xf32>
    %144 = arith.cmpf ogt, %142, %143 : vector<8x8xf32>
    %cst_49 = arith.constant 2.000000e-01 : f32
    %145 = vector.broadcast %cst_49 : f32 to vector<8x8xf32>
    %146 = arith.mulf %145, %142 : vector<8x8xf32>
    %147 = arith.select %144, %142, %146 : vector<8x8xi1>, vector<8x8xf32>
    %148 = arith.addf %147, %114 : vector<8x8xf32>
    %cst_50 = arith.constant dense<0xFF800000> : vector<8xf32>
    %149 = vector.multi_reduction <maximumf>, %148, %cst_50 [1] : vector<8x8xf32> to vector<8xf32>
    %150 = vector.shape_cast %149 : vector<8xf32> to vector<8x1xf32>
    %151 = vector.broadcast %150 : vector<8x1xf32> to vector<8x8xf32>
    %152 = arith.subf %148, %151 : vector<8x8xf32>
    %153 = math.exp %152 : vector<8x8xf32>
    %cst_51 = arith.constant dense<0.000000e+00> : vector<8xf32>
    %154 = vector.multi_reduction <add>, %153, %cst_51 [1] : vector<8x8xf32> to vector<8xf32>
    %155 = vector.shape_cast %154 : vector<8xf32> to vector<8x1xf32>
    %156 = vector.broadcast %155 : vector<8x1xf32> to vector<8x8xf32>
    %157 = arith.divf %153, %156 : vector<8x8xf32>
    %158 = vector.extract_strided_slice %115 {offsets = [0, 16], sizes = [8, 16], strides = [1, 1]} : vector<8x64xf32> to vector<8x16xf32>
    %cst_52 = arith.constant dense<0.000000e+00> : vector<8x16xf32>
    %159 = tpu.matmul %157, %158, %cst_52 {dimension_numbers = #tpu.dot_dimension_numbers<[1], [0], [0], [1], [0, 0, 1, 1], [], []>} : vector<8x8xf32>, vector<8x16xf32>, vector<8x16xf32> -> vector<8x16xf32>
    %160 = vector.extract_strided_slice %18 {offsets = [8, 2], sizes = [8, 1], strides = [1, 1]} : vector<16x4xf32> to vector<8x1xf32>
    %161 = vector.extract_strided_slice %20 {offsets = [2, 8], sizes = [1, 8], strides = [1, 1]} : vector<4x16xf32> to vector<1x8xf32>
    %162 = vector.broadcast %160 : vector<8x1xf32> to vector<8x8xf32>
    %163 = vector.broadcast %161 : vector<1x8xf32> to vector<8x8xf32>
    %164 = arith.addf %162, %163 : vector<8x8xf32>
    %cst_53 = arith.constant 0.000000e+00 : f32
    %165 = vector.broadcast %cst_53 : f32 to vector<8x8xf32>
    %166 = arith.cmpf ogt, %164, %165 : vector<8x8xf32>
    %cst_54 = arith.constant 2.000000e-01 : f32
    %167 = vector.broadcast %cst_54 : f32 to vector<8x8xf32>
    %168 = arith.mulf %167, %164 : vector<8x8xf32>
    %169 = arith.select %166, %164, %168 : vector<8x8xi1>, vector<8x8xf32>
    %170 = arith.addf %169, %114 : vector<8x8xf32>
    %cst_55 = arith.constant dense<0xFF800000> : vector<8xf32>
    %171 = vector.multi_reduction <maximumf>, %170, %cst_55 [1] : vector<8x8xf32> to vector<8xf32>
    %172 = vector.shape_cast %171 : vector<8xf32> to vector<8x1xf32>
    %173 = vector.broadcast %172 : vector<8x1xf32> to vector<8x8xf32>
    %174 = arith.subf %170, %173 : vector<8x8xf32>
    %175 = math.exp %174 : vector<8x8xf32>
    %cst_56 = arith.constant dense<0.000000e+00> : vector<8xf32>
    %176 = vector.multi_reduction <add>, %175, %cst_56 [1] : vector<8x8xf32> to vector<8xf32>
    %177 = vector.shape_cast %176 : vector<8xf32> to vector<8x1xf32>
    %178 = vector.broadcast %177 : vector<8x1xf32> to vector<8x8xf32>
    %179 = arith.divf %175, %178 : vector<8x8xf32>
    %180 = vector.extract_strided_slice %115 {offsets = [0, 32], sizes = [8, 16], strides = [1, 1]} : vector<8x64xf32> to vector<8x16xf32>
    %cst_57 = arith.constant dense<0.000000e+00> : vector<8x16xf32>
    %181 = tpu.matmul %179, %180, %cst_57 {dimension_numbers = #tpu.dot_dimension_numbers<[1], [0], [0], [1], [0, 0, 1, 1], [], []>} : vector<8x8xf32>, vector<8x16xf32>, vector<8x16xf32> -> vector<8x16xf32>
    %182 = vector.extract_strided_slice %18 {offsets = [8, 3], sizes = [8, 1], strides = [1, 1]} : vector<16x4xf32> to vector<8x1xf32>
    %183 = vector.extract_strided_slice %20 {offsets = [3, 8], sizes = [1, 8], strides = [1, 1]} : vector<4x16xf32> to vector<1x8xf32>
    %184 = vector.broadcast %182 : vector<8x1xf32> to vector<8x8xf32>
    %185 = vector.broadcast %183 : vector<1x8xf32> to vector<8x8xf32>
    %186 = arith.addf %184, %185 : vector<8x8xf32>
    %cst_58 = arith.constant 0.000000e+00 : f32
    %187 = vector.broadcast %cst_58 : f32 to vector<8x8xf32>
    %188 = arith.cmpf ogt, %186, %187 : vector<8x8xf32>
    %cst_59 = arith.constant 2.000000e-01 : f32
    %189 = vector.broadcast %cst_59 : f32 to vector<8x8xf32>
    %190 = arith.mulf %189, %186 : vector<8x8xf32>
    %191 = arith.select %188, %186, %190 : vector<8x8xi1>, vector<8x8xf32>
    %192 = arith.addf %191, %114 : vector<8x8xf32>
    %cst_60 = arith.constant dense<0xFF800000> : vector<8xf32>
    %193 = vector.multi_reduction <maximumf>, %192, %cst_60 [1] : vector<8x8xf32> to vector<8xf32>
    %194 = vector.shape_cast %193 : vector<8xf32> to vector<8x1xf32>
    %195 = vector.broadcast %194 : vector<8x1xf32> to vector<8x8xf32>
    %196 = arith.subf %192, %195 : vector<8x8xf32>
    %197 = math.exp %196 : vector<8x8xf32>
    %cst_61 = arith.constant dense<0.000000e+00> : vector<8xf32>
    %198 = vector.multi_reduction <add>, %197, %cst_61 [1] : vector<8x8xf32> to vector<8xf32>
    %199 = vector.shape_cast %198 : vector<8xf32> to vector<8x1xf32>
    %200 = vector.broadcast %199 : vector<8x1xf32> to vector<8x8xf32>
    %201 = arith.divf %197, %200 : vector<8x8xf32>
    %202 = vector.extract_strided_slice %115 {offsets = [0, 48], sizes = [8, 16], strides = [1, 1]} : vector<8x64xf32> to vector<8x16xf32>
    %cst_62 = arith.constant dense<0.000000e+00> : vector<8x16xf32>
    %203 = tpu.matmul %201, %202, %cst_62 {dimension_numbers = #tpu.dot_dimension_numbers<[1], [0], [0], [1], [0, 0, 1, 1], [], []>} : vector<8x8xf32>, vector<8x16xf32>, vector<8x16xf32> -> vector<8x16xf32>
    %204 = tpu.concatenate %137, %159, %181, %203 in 1 : vector<8x16xf32>, vector<8x16xf32>, vector<8x16xf32>, vector<8x16xf32> -> vector<8x64xf32>
    %205 = tpu.concatenate %112, %204 in 0 : vector<8x64xf32>, vector<8x64xf32> -> vector<16x64xf32>
    %c0_63 = arith.constant 0 : index
    %c0_64 = arith.constant 0 : index
    %206 = vector.load %arg9[%c0_63, %c0_64] : memref<64x32xf32, #tpu.memory_space<vmem>>, vector<64x32xf32>
    %cst_65 = arith.constant dense<0.000000e+00> : vector<16x32xf32>
    %207 = tpu.matmul %205, %206, %cst_65 {dimension_numbers = #tpu.dot_dimension_numbers<[1], [0], [0], [1], [0, 0, 1, 1], [], []>} : vector<16x64xf32>, vector<64x32xf32>, vector<16x32xf32> -> vector<16x32xf32>
    %c0_66 = arith.constant 0 : index
    %c0_67 = arith.constant 0 : index
    %208 = vector.load %arg10[%c0_66, %c0_67] : memref<1x32xf32, #tpu.memory_space<vmem>>, vector<1x32xf32>
    %209 = vector.broadcast %208 : vector<1x32xf32> to vector<16x32xf32>
    %210 = arith.addf %207, %209 : vector<16x32xf32>
    %cst_68 = arith.constant 0.000000e+00 : f32
    %211 = vector.broadcast %cst_68 : f32 to vector<16x32xf32>
    %212 = arith.cmpf ogt, %210, %211 : vector<16x32xf32>
    %cst_69 = arith.constant 0.000000e+00 : f32
    %213 = vector.broadcast %cst_69 : f32 to vector<16x32xf32>
    %214 = arith.minimumf %210, %213 : vector<16x32xf32>
    %215 = math.exp %214 : vector<16x32xf32>
    %cst_70 = arith.constant 1.000000e+00 : f32
    %216 = vector.broadcast %cst_70 : f32 to vector<16x32xf32>
    %217 = arith.subf %215, %216 : vector<16x32xf32>
    %218 = arith.select %212, %210, %217 : vector<16x32xi1>, vector<16x32xf32>
    %219 = arith.addf %218, %14 : vector<16x32xf32>
    %c0_71 = arith.constant 0 : index
    %c0_72 = arith.constant 0 : index
    %220 = vector.load %arg11[%c0_71, %c0_72] : memref<1x32xf32, #tpu.memory_space<vmem>>, vector<1x32xf32>
    %c0_73 = arith.constant 0 : index
    %c0_74 = arith.constant 0 : index
    %221 = vector.load %arg12[%c0_73, %c0_74] : memref<1x32xf32, #tpu.memory_space<vmem>>, vector<1x32xf32>
    %cst_75 = arith.constant dense<0.000000e+00> : vector<16xf32>
    %222 = vector.multi_reduction <add>, %219, %cst_75 [1] : vector<16x32xf32> to vector<16xf32>
    %223 = vector.shape_cast %222 : vector<16xf32> to vector<16x1xf32>
    %cst_76 = arith.constant 3.200000e+01 : f32
    %224 = vector.broadcast %cst_76 : f32 to vector<16x1xf32>
    %225 = arith.divf %223, %224 : vector<16x1xf32>
    %226 = vector.broadcast %225 : vector<16x1xf32> to vector<16x32xf32>
    %227 = arith.subf %219, %226 : vector<16x32xf32>
    %228 = arith.mulf %227, %227 : vector<16x32xf32>
    %cst_77 = arith.constant dense<0.000000e+00> : vector<16xf32>
    %229 = vector.multi_reduction <add>, %228, %cst_77 [1] : vector<16x32xf32> to vector<16xf32>
    %230 = vector.shape_cast %229 : vector<16xf32> to vector<16x1xf32>
    %cst_78 = arith.constant 3.200000e+01 : f32
    %231 = vector.broadcast %cst_78 : f32 to vector<16x1xf32>
    %232 = arith.divf %230, %231 : vector<16x1xf32>
    %233 = vector.broadcast %225 : vector<16x1xf32> to vector<16x32xf32>
    %234 = arith.subf %219, %233 : vector<16x32xf32>
    %cst_79 = arith.constant 9.99999974E-6 : f32
    %235 = vector.broadcast %cst_79 : f32 to vector<16x1xf32>
    %236 = arith.addf %232, %235 : vector<16x1xf32>
    %237 = math.rsqrt %236 : vector<16x1xf32>
    %238 = vector.broadcast %237 : vector<16x1xf32> to vector<16x32xf32>
    %239 = arith.mulf %234, %238 : vector<16x32xf32>
    %240 = vector.broadcast %220 : vector<1x32xf32> to vector<16x32xf32>
    %241 = arith.mulf %239, %240 : vector<16x32xf32>
    %242 = vector.broadcast %221 : vector<1x32xf32> to vector<16x32xf32>
    %243 = arith.addf %241, %242 : vector<16x32xf32>
    %c0_80 = arith.constant 0 : index
    %c0_81 = arith.constant 0 : index
    %244 = vector.load %arg13[%c0_80, %c0_81] : memref<32x64xf32, #tpu.memory_space<vmem>>, vector<32x64xf32>
    %cst_82 = arith.constant dense<0.000000e+00> : vector<16x64xf32>
    %245 = tpu.matmul %243, %244, %cst_82 {dimension_numbers = #tpu.dot_dimension_numbers<[1], [0], [0], [1], [0, 0, 1, 1], [], []>} : vector<16x32xf32>, vector<32x64xf32>, vector<16x64xf32> -> vector<16x64xf32>
    %c0_83 = arith.constant 0 : index
    %c0_84 = arith.constant 0 : index
    %246 = vector.load %arg14[%c0_83, %c0_84] : memref<64x4xf32, #tpu.memory_space<vmem>>, vector<64x4xf32>
    %cst_85 = arith.constant dense<0.000000e+00> : vector<16x4xf32>
    %247 = tpu.matmul %245, %246, %cst_85 {dimension_numbers = #tpu.dot_dimension_numbers<[1], [0], [0], [1], [0, 0, 1, 1], [], []>} : vector<16x64xf32>, vector<64x4xf32>, vector<16x4xf32> -> vector<16x4xf32>
    %c0_86 = arith.constant 0 : index
    %c0_87 = arith.constant 0 : index
    %248 = vector.load %arg15[%c0_86, %c0_87] : memref<4x64xf32, #tpu.memory_space<vmem>>, vector<4x64xf32>
    %cst_88 = arith.constant dense<0.000000e+00> : vector<4x16xf32>
    %249 = tpu.matmul %248, %245, %cst_88 {dimension_numbers = #tpu.dot_dimension_numbers<[1], [1], [0], [0], [0, 0, 1, 0], [], []>} : vector<4x64xf32>, vector<16x64xf32>, vector<4x16xf32> -> vector<4x16xf32>
    %c0_89 = arith.constant 0 : index
    %c0_90 = arith.constant 0 : index
    %c0_91 = arith.constant 0 : index
    %250 = vector.load %arg3[%c0_89, %c0_90, %c0_91] : memref<2x8x8xf32, #tpu.memory_space<vmem>>, vector<1x8x8xf32>
    %251 = vector.shape_cast %250 : vector<1x8x8xf32> to vector<8x8xf32>
    %252 = vector.extract_strided_slice %245 {offsets = [0, 0], sizes = [8, 64], strides = [1, 1]} : vector<16x64xf32> to vector<8x64xf32>
    %253 = vector.extract_strided_slice %247 {offsets = [0, 0], sizes = [8, 1], strides = [1, 1]} : vector<16x4xf32> to vector<8x1xf32>
    %254 = vector.extract_strided_slice %249 {offsets = [0, 0], sizes = [1, 8], strides = [1, 1]} : vector<4x16xf32> to vector<1x8xf32>
    %255 = vector.broadcast %253 : vector<8x1xf32> to vector<8x8xf32>
    %256 = vector.broadcast %254 : vector<1x8xf32> to vector<8x8xf32>
    %257 = arith.addf %255, %256 : vector<8x8xf32>
    %cst_92 = arith.constant 0.000000e+00 : f32
    %258 = vector.broadcast %cst_92 : f32 to vector<8x8xf32>
    %259 = arith.cmpf ogt, %257, %258 : vector<8x8xf32>
    %cst_93 = arith.constant 2.000000e-01 : f32
    %260 = vector.broadcast %cst_93 : f32 to vector<8x8xf32>
    %261 = arith.mulf %260, %257 : vector<8x8xf32>
    %262 = arith.select %259, %257, %261 : vector<8x8xi1>, vector<8x8xf32>
    %263 = arith.addf %262, %251 : vector<8x8xf32>
    %cst_94 = arith.constant dense<0xFF800000> : vector<8xf32>
    %264 = vector.multi_reduction <maximumf>, %263, %cst_94 [1] : vector<8x8xf32> to vector<8xf32>
    %265 = vector.shape_cast %264 : vector<8xf32> to vector<8x1xf32>
    %266 = vector.broadcast %265 : vector<8x1xf32> to vector<8x8xf32>
    %267 = arith.subf %263, %266 : vector<8x8xf32>
    %268 = math.exp %267 : vector<8x8xf32>
    %cst_95 = arith.constant dense<0.000000e+00> : vector<8xf32>
    %269 = vector.multi_reduction <add>, %268, %cst_95 [1] : vector<8x8xf32> to vector<8xf32>
    %270 = vector.shape_cast %269 : vector<8xf32> to vector<8x1xf32>
    %271 = vector.broadcast %270 : vector<8x1xf32> to vector<8x8xf32>
    %272 = arith.divf %268, %271 : vector<8x8xf32>
    %273 = vector.extract_strided_slice %252 {offsets = [0, 0], sizes = [8, 16], strides = [1, 1]} : vector<8x64xf32> to vector<8x16xf32>
    %cst_96 = arith.constant dense<0.000000e+00> : vector<8x16xf32>
    %274 = tpu.matmul %272, %273, %cst_96 {dimension_numbers = #tpu.dot_dimension_numbers<[1], [0], [0], [1], [0, 0, 1, 1], [], []>} : vector<8x8xf32>, vector<8x16xf32>, vector<8x16xf32> -> vector<8x16xf32>
    %275 = vector.extract_strided_slice %247 {offsets = [0, 1], sizes = [8, 1], strides = [1, 1]} : vector<16x4xf32> to vector<8x1xf32>
    %276 = vector.extract_strided_slice %249 {offsets = [1, 0], sizes = [1, 8], strides = [1, 1]} : vector<4x16xf32> to vector<1x8xf32>
    %277 = vector.broadcast %275 : vector<8x1xf32> to vector<8x8xf32>
    %278 = vector.broadcast %276 : vector<1x8xf32> to vector<8x8xf32>
    %279 = arith.addf %277, %278 : vector<8x8xf32>
    %cst_97 = arith.constant 0.000000e+00 : f32
    %280 = vector.broadcast %cst_97 : f32 to vector<8x8xf32>
    %281 = arith.cmpf ogt, %279, %280 : vector<8x8xf32>
    %cst_98 = arith.constant 2.000000e-01 : f32
    %282 = vector.broadcast %cst_98 : f32 to vector<8x8xf32>
    %283 = arith.mulf %282, %279 : vector<8x8xf32>
    %284 = arith.select %281, %279, %283 : vector<8x8xi1>, vector<8x8xf32>
    %285 = arith.addf %284, %251 : vector<8x8xf32>
    %cst_99 = arith.constant dense<0xFF800000> : vector<8xf32>
    %286 = vector.multi_reduction <maximumf>, %285, %cst_99 [1] : vector<8x8xf32> to vector<8xf32>
    %287 = vector.shape_cast %286 : vector<8xf32> to vector<8x1xf32>
    %288 = vector.broadcast %287 : vector<8x1xf32> to vector<8x8xf32>
    %289 = arith.subf %285, %288 : vector<8x8xf32>
    %290 = math.exp %289 : vector<8x8xf32>
    %cst_100 = arith.constant dense<0.000000e+00> : vector<8xf32>
    %291 = vector.multi_reduction <add>, %290, %cst_100 [1] : vector<8x8xf32> to vector<8xf32>
    %292 = vector.shape_cast %291 : vector<8xf32> to vector<8x1xf32>
    %293 = vector.broadcast %292 : vector<8x1xf32> to vector<8x8xf32>
    %294 = arith.divf %290, %293 : vector<8x8xf32>
    %295 = vector.extract_strided_slice %252 {offsets = [0, 16], sizes = [8, 16], strides = [1, 1]} : vector<8x64xf32> to vector<8x16xf32>
    %cst_101 = arith.constant dense<0.000000e+00> : vector<8x16xf32>
    %296 = tpu.matmul %294, %295, %cst_101 {dimension_numbers = #tpu.dot_dimension_numbers<[1], [0], [0], [1], [0, 0, 1, 1], [], []>} : vector<8x8xf32>, vector<8x16xf32>, vector<8x16xf32> -> vector<8x16xf32>
    %297 = vector.extract_strided_slice %247 {offsets = [0, 2], sizes = [8, 1], strides = [1, 1]} : vector<16x4xf32> to vector<8x1xf32>
    %298 = vector.extract_strided_slice %249 {offsets = [2, 0], sizes = [1, 8], strides = [1, 1]} : vector<4x16xf32> to vector<1x8xf32>
    %299 = vector.broadcast %297 : vector<8x1xf32> to vector<8x8xf32>
    %300 = vector.broadcast %298 : vector<1x8xf32> to vector<8x8xf32>
    %301 = arith.addf %299, %300 : vector<8x8xf32>
    %cst_102 = arith.constant 0.000000e+00 : f32
    %302 = vector.broadcast %cst_102 : f32 to vector<8x8xf32>
    %303 = arith.cmpf ogt, %301, %302 : vector<8x8xf32>
    %cst_103 = arith.constant 2.000000e-01 : f32
    %304 = vector.broadcast %cst_103 : f32 to vector<8x8xf32>
    %305 = arith.mulf %304, %301 : vector<8x8xf32>
    %306 = arith.select %303, %301, %305 : vector<8x8xi1>, vector<8x8xf32>
    %307 = arith.addf %306, %251 : vector<8x8xf32>
    %cst_104 = arith.constant dense<0xFF800000> : vector<8xf32>
    %308 = vector.multi_reduction <maximumf>, %307, %cst_104 [1] : vector<8x8xf32> to vector<8xf32>
    %309 = vector.shape_cast %308 : vector<8xf32> to vector<8x1xf32>
    %310 = vector.broadcast %309 : vector<8x1xf32> to vector<8x8xf32>
    %311 = arith.subf %307, %310 : vector<8x8xf32>
    %312 = math.exp %311 : vector<8x8xf32>
    %cst_105 = arith.constant dense<0.000000e+00> : vector<8xf32>
    %313 = vector.multi_reduction <add>, %312, %cst_105 [1] : vector<8x8xf32> to vector<8xf32>
    %314 = vector.shape_cast %313 : vector<8xf32> to vector<8x1xf32>
    %315 = vector.broadcast %314 : vector<8x1xf32> to vector<8x8xf32>
    %316 = arith.divf %312, %315 : vector<8x8xf32>
    %317 = vector.extract_strided_slice %252 {offsets = [0, 32], sizes = [8, 16], strides = [1, 1]} : vector<8x64xf32> to vector<8x16xf32>
    %cst_106 = arith.constant dense<0.000000e+00> : vector<8x16xf32>
    %318 = tpu.matmul %316, %317, %cst_106 {dimension_numbers = #tpu.dot_dimension_numbers<[1], [0], [0], [1], [0, 0, 1, 1], [], []>} : vector<8x8xf32>, vector<8x16xf32>, vector<8x16xf32> -> vector<8x16xf32>
    %319 = vector.extract_strided_slice %247 {offsets = [0, 3], sizes = [8, 1], strides = [1, 1]} : vector<16x4xf32> to vector<8x1xf32>
    %320 = vector.extract_strided_slice %249 {offsets = [3, 0], sizes = [1, 8], strides = [1, 1]} : vector<4x16xf32> to vector<1x8xf32>
    %321 = vector.broadcast %319 : vector<8x1xf32> to vector<8x8xf32>
    %322 = vector.broadcast %320 : vector<1x8xf32> to vector<8x8xf32>
    %323 = arith.addf %321, %322 : vector<8x8xf32>
    %cst_107 = arith.constant 0.000000e+00 : f32
    %324 = vector.broadcast %cst_107 : f32 to vector<8x8xf32>
    %325 = arith.cmpf ogt, %323, %324 : vector<8x8xf32>
    %cst_108 = arith.constant 2.000000e-01 : f32
    %326 = vector.broadcast %cst_108 : f32 to vector<8x8xf32>
    %327 = arith.mulf %326, %323 : vector<8x8xf32>
    %328 = arith.select %325, %323, %327 : vector<8x8xi1>, vector<8x8xf32>
    %329 = arith.addf %328, %251 : vector<8x8xf32>
    %cst_109 = arith.constant dense<0xFF800000> : vector<8xf32>
    %330 = vector.multi_reduction <maximumf>, %329, %cst_109 [1] : vector<8x8xf32> to vector<8xf32>
    %331 = vector.shape_cast %330 : vector<8xf32> to vector<8x1xf32>
    %332 = vector.broadcast %331 : vector<8x1xf32> to vector<8x8xf32>
    %333 = arith.subf %329, %332 : vector<8x8xf32>
    %334 = math.exp %333 : vector<8x8xf32>
    %cst_110 = arith.constant dense<0.000000e+00> : vector<8xf32>
    %335 = vector.multi_reduction <add>, %334, %cst_110 [1] : vector<8x8xf32> to vector<8xf32>
    %336 = vector.shape_cast %335 : vector<8xf32> to vector<8x1xf32>
    %337 = vector.broadcast %336 : vector<8x1xf32> to vector<8x8xf32>
    %338 = arith.divf %334, %337 : vector<8x8xf32>
    %339 = vector.extract_strided_slice %252 {offsets = [0, 48], sizes = [8, 16], strides = [1, 1]} : vector<8x64xf32> to vector<8x16xf32>
    %cst_111 = arith.constant dense<0.000000e+00> : vector<8x16xf32>
    %340 = tpu.matmul %338, %339, %cst_111 {dimension_numbers = #tpu.dot_dimension_numbers<[1], [0], [0], [1], [0, 0, 1, 1], [], []>} : vector<8x8xf32>, vector<8x16xf32>, vector<8x16xf32> -> vector<8x16xf32>
    %341 = tpu.concatenate %274, %296, %318, %340 in 1 : vector<8x16xf32>, vector<8x16xf32>, vector<8x16xf32>, vector<8x16xf32> -> vector<8x64xf32>
    %c1_112 = arith.constant 1 : index
    %c0_113 = arith.constant 0 : index
    %c0_114 = arith.constant 0 : index
    %342 = vector.load %arg3[%c1_112, %c0_113, %c0_114] : memref<2x8x8xf32, #tpu.memory_space<vmem>>, vector<1x8x8xf32>
    %343 = vector.shape_cast %342 : vector<1x8x8xf32> to vector<8x8xf32>
    %344 = vector.extract_strided_slice %245 {offsets = [8, 0], sizes = [8, 64], strides = [1, 1]} : vector<16x64xf32> to vector<8x64xf32>
    %345 = vector.extract_strided_slice %247 {offsets = [8, 0], sizes = [8, 1], strides = [1, 1]} : vector<16x4xf32> to vector<8x1xf32>
    %346 = vector.extract_strided_slice %249 {offsets = [0, 8], sizes = [1, 8], strides = [1, 1]} : vector<4x16xf32> to vector<1x8xf32>
    %347 = vector.broadcast %345 : vector<8x1xf32> to vector<8x8xf32>
    %348 = vector.broadcast %346 : vector<1x8xf32> to vector<8x8xf32>
    %349 = arith.addf %347, %348 : vector<8x8xf32>
    %cst_115 = arith.constant 0.000000e+00 : f32
    %350 = vector.broadcast %cst_115 : f32 to vector<8x8xf32>
    %351 = arith.cmpf ogt, %349, %350 : vector<8x8xf32>
    %cst_116 = arith.constant 2.000000e-01 : f32
    %352 = vector.broadcast %cst_116 : f32 to vector<8x8xf32>
    %353 = arith.mulf %352, %349 : vector<8x8xf32>
    %354 = arith.select %351, %349, %353 : vector<8x8xi1>, vector<8x8xf32>
    %355 = arith.addf %354, %343 : vector<8x8xf32>
    %cst_117 = arith.constant dense<0xFF800000> : vector<8xf32>
    %356 = vector.multi_reduction <maximumf>, %355, %cst_117 [1] : vector<8x8xf32> to vector<8xf32>
    %357 = vector.shape_cast %356 : vector<8xf32> to vector<8x1xf32>
    %358 = vector.broadcast %357 : vector<8x1xf32> to vector<8x8xf32>
    %359 = arith.subf %355, %358 : vector<8x8xf32>
    %360 = math.exp %359 : vector<8x8xf32>
    %cst_118 = arith.constant dense<0.000000e+00> : vector<8xf32>
    %361 = vector.multi_reduction <add>, %360, %cst_118 [1] : vector<8x8xf32> to vector<8xf32>
    %362 = vector.shape_cast %361 : vector<8xf32> to vector<8x1xf32>
    %363 = vector.broadcast %362 : vector<8x1xf32> to vector<8x8xf32>
    %364 = arith.divf %360, %363 : vector<8x8xf32>
    %365 = vector.extract_strided_slice %344 {offsets = [0, 0], sizes = [8, 16], strides = [1, 1]} : vector<8x64xf32> to vector<8x16xf32>
    %cst_119 = arith.constant dense<0.000000e+00> : vector<8x16xf32>
    %366 = tpu.matmul %364, %365, %cst_119 {dimension_numbers = #tpu.dot_dimension_numbers<[1], [0], [0], [1], [0, 0, 1, 1], [], []>} : vector<8x8xf32>, vector<8x16xf32>, vector<8x16xf32> -> vector<8x16xf32>
    %367 = vector.extract_strided_slice %247 {offsets = [8, 1], sizes = [8, 1], strides = [1, 1]} : vector<16x4xf32> to vector<8x1xf32>
    %368 = vector.extract_strided_slice %249 {offsets = [1, 8], sizes = [1, 8], strides = [1, 1]} : vector<4x16xf32> to vector<1x8xf32>
    %369 = vector.broadcast %367 : vector<8x1xf32> to vector<8x8xf32>
    %370 = vector.broadcast %368 : vector<1x8xf32> to vector<8x8xf32>
    %371 = arith.addf %369, %370 : vector<8x8xf32>
    %cst_120 = arith.constant 0.000000e+00 : f32
    %372 = vector.broadcast %cst_120 : f32 to vector<8x8xf32>
    %373 = arith.cmpf ogt, %371, %372 : vector<8x8xf32>
    %cst_121 = arith.constant 2.000000e-01 : f32
    %374 = vector.broadcast %cst_121 : f32 to vector<8x8xf32>
    %375 = arith.mulf %374, %371 : vector<8x8xf32>
    %376 = arith.select %373, %371, %375 : vector<8x8xi1>, vector<8x8xf32>
    %377 = arith.addf %376, %343 : vector<8x8xf32>
    %cst_122 = arith.constant dense<0xFF800000> : vector<8xf32>
    %378 = vector.multi_reduction <maximumf>, %377, %cst_122 [1] : vector<8x8xf32> to vector<8xf32>
    %379 = vector.shape_cast %378 : vector<8xf32> to vector<8x1xf32>
    %380 = vector.broadcast %379 : vector<8x1xf32> to vector<8x8xf32>
    %381 = arith.subf %377, %380 : vector<8x8xf32>
    %382 = math.exp %381 : vector<8x8xf32>
    %cst_123 = arith.constant dense<0.000000e+00> : vector<8xf32>
    %383 = vector.multi_reduction <add>, %382, %cst_123 [1] : vector<8x8xf32> to vector<8xf32>
    %384 = vector.shape_cast %383 : vector<8xf32> to vector<8x1xf32>
    %385 = vector.broadcast %384 : vector<8x1xf32> to vector<8x8xf32>
    %386 = arith.divf %382, %385 : vector<8x8xf32>
    %387 = vector.extract_strided_slice %344 {offsets = [0, 16], sizes = [8, 16], strides = [1, 1]} : vector<8x64xf32> to vector<8x16xf32>
    %cst_124 = arith.constant dense<0.000000e+00> : vector<8x16xf32>
    %388 = tpu.matmul %386, %387, %cst_124 {dimension_numbers = #tpu.dot_dimension_numbers<[1], [0], [0], [1], [0, 0, 1, 1], [], []>} : vector<8x8xf32>, vector<8x16xf32>, vector<8x16xf32> -> vector<8x16xf32>
    %389 = vector.extract_strided_slice %247 {offsets = [8, 2], sizes = [8, 1], strides = [1, 1]} : vector<16x4xf32> to vector<8x1xf32>
    %390 = vector.extract_strided_slice %249 {offsets = [2, 8], sizes = [1, 8], strides = [1, 1]} : vector<4x16xf32> to vector<1x8xf32>
    %391 = vector.broadcast %389 : vector<8x1xf32> to vector<8x8xf32>
    %392 = vector.broadcast %390 : vector<1x8xf32> to vector<8x8xf32>
    %393 = arith.addf %391, %392 : vector<8x8xf32>
    %cst_125 = arith.constant 0.000000e+00 : f32
    %394 = vector.broadcast %cst_125 : f32 to vector<8x8xf32>
    %395 = arith.cmpf ogt, %393, %394 : vector<8x8xf32>
    %cst_126 = arith.constant 2.000000e-01 : f32
    %396 = vector.broadcast %cst_126 : f32 to vector<8x8xf32>
    %397 = arith.mulf %396, %393 : vector<8x8xf32>
    %398 = arith.select %395, %393, %397 : vector<8x8xi1>, vector<8x8xf32>
    %399 = arith.addf %398, %343 : vector<8x8xf32>
    %cst_127 = arith.constant dense<0xFF800000> : vector<8xf32>
    %400 = vector.multi_reduction <maximumf>, %399, %cst_127 [1] : vector<8x8xf32> to vector<8xf32>
    %401 = vector.shape_cast %400 : vector<8xf32> to vector<8x1xf32>
    %402 = vector.broadcast %401 : vector<8x1xf32> to vector<8x8xf32>
    %403 = arith.subf %399, %402 : vector<8x8xf32>
    %404 = math.exp %403 : vector<8x8xf32>
    %cst_128 = arith.constant dense<0.000000e+00> : vector<8xf32>
    %405 = vector.multi_reduction <add>, %404, %cst_128 [1] : vector<8x8xf32> to vector<8xf32>
    %406 = vector.shape_cast %405 : vector<8xf32> to vector<8x1xf32>
    %407 = vector.broadcast %406 : vector<8x1xf32> to vector<8x8xf32>
    %408 = arith.divf %404, %407 : vector<8x8xf32>
    %409 = vector.extract_strided_slice %344 {offsets = [0, 32], sizes = [8, 16], strides = [1, 1]} : vector<8x64xf32> to vector<8x16xf32>
    %cst_129 = arith.constant dense<0.000000e+00> : vector<8x16xf32>
    %410 = tpu.matmul %408, %409, %cst_129 {dimension_numbers = #tpu.dot_dimension_numbers<[1], [0], [0], [1], [0, 0, 1, 1], [], []>} : vector<8x8xf32>, vector<8x16xf32>, vector<8x16xf32> -> vector<8x16xf32>
    %411 = vector.extract_strided_slice %247 {offsets = [8, 3], sizes = [8, 1], strides = [1, 1]} : vector<16x4xf32> to vector<8x1xf32>
    %412 = vector.extract_strided_slice %249 {offsets = [3, 8], sizes = [1, 8], strides = [1, 1]} : vector<4x16xf32> to vector<1x8xf32>
    %413 = vector.broadcast %411 : vector<8x1xf32> to vector<8x8xf32>
    %414 = vector.broadcast %412 : vector<1x8xf32> to vector<8x8xf32>
    %415 = arith.addf %413, %414 : vector<8x8xf32>
    %cst_130 = arith.constant 0.000000e+00 : f32
    %416 = vector.broadcast %cst_130 : f32 to vector<8x8xf32>
    %417 = arith.cmpf ogt, %415, %416 : vector<8x8xf32>
    %cst_131 = arith.constant 2.000000e-01 : f32
    %418 = vector.broadcast %cst_131 : f32 to vector<8x8xf32>
    %419 = arith.mulf %418, %415 : vector<8x8xf32>
    %420 = arith.select %417, %415, %419 : vector<8x8xi1>, vector<8x8xf32>
    %421 = arith.addf %420, %343 : vector<8x8xf32>
    %cst_132 = arith.constant dense<0xFF800000> : vector<8xf32>
    %422 = vector.multi_reduction <maximumf>, %421, %cst_132 [1] : vector<8x8xf32> to vector<8xf32>
    %423 = vector.shape_cast %422 : vector<8xf32> to vector<8x1xf32>
    %424 = vector.broadcast %423 : vector<8x1xf32> to vector<8x8xf32>
    %425 = arith.subf %421, %424 : vector<8x8xf32>
    %426 = math.exp %425 : vector<8x8xf32>
    %cst_133 = arith.constant dense<0.000000e+00> : vector<8xf32>
    %427 = vector.multi_reduction <add>, %426, %cst_133 [1] : vector<8x8xf32> to vector<8xf32>
    %428 = vector.shape_cast %427 : vector<8xf32> to vector<8x1xf32>
    %429 = vector.broadcast %428 : vector<8x1xf32> to vector<8x8xf32>
    %430 = arith.divf %426, %429 : vector<8x8xf32>
    %431 = vector.extract_strided_slice %344 {offsets = [0, 48], sizes = [8, 16], strides = [1, 1]} : vector<8x64xf32> to vector<8x16xf32>
    %cst_134 = arith.constant dense<0.000000e+00> : vector<8x16xf32>
    %432 = tpu.matmul %430, %431, %cst_134 {dimension_numbers = #tpu.dot_dimension_numbers<[1], [0], [0], [1], [0, 0, 1, 1], [], []>} : vector<8x8xf32>, vector<8x16xf32>, vector<8x16xf32> -> vector<8x16xf32>
    %433 = tpu.concatenate %366, %388, %410, %432 in 1 : vector<8x16xf32>, vector<8x16xf32>, vector<8x16xf32>, vector<8x16xf32> -> vector<8x64xf32>
    %434 = tpu.concatenate %341, %433 in 0 : vector<8x64xf32>, vector<8x64xf32> -> vector<16x64xf32>
    %c0_135 = arith.constant 0 : index
    %c0_136 = arith.constant 0 : index
    %435 = vector.load %arg16[%c0_135, %c0_136] : memref<64x32xf32, #tpu.memory_space<vmem>>, vector<64x32xf32>
    %cst_137 = arith.constant dense<0.000000e+00> : vector<16x32xf32>
    %436 = tpu.matmul %434, %435, %cst_137 {dimension_numbers = #tpu.dot_dimension_numbers<[1], [0], [0], [1], [0, 0, 1, 1], [], []>} : vector<16x64xf32>, vector<64x32xf32>, vector<16x32xf32> -> vector<16x32xf32>
    %c0_138 = arith.constant 0 : index
    %c0_139 = arith.constant 0 : index
    %437 = vector.load %arg17[%c0_138, %c0_139] : memref<1x32xf32, #tpu.memory_space<vmem>>, vector<1x32xf32>
    %438 = vector.broadcast %437 : vector<1x32xf32> to vector<16x32xf32>
    %439 = arith.addf %436, %438 : vector<16x32xf32>
    %cst_140 = arith.constant 0.000000e+00 : f32
    %440 = vector.broadcast %cst_140 : f32 to vector<16x32xf32>
    %441 = arith.cmpf ogt, %439, %440 : vector<16x32xf32>
    %cst_141 = arith.constant 0.000000e+00 : f32
    %442 = vector.broadcast %cst_141 : f32 to vector<16x32xf32>
    %443 = arith.minimumf %439, %442 : vector<16x32xf32>
    %444 = math.exp %443 : vector<16x32xf32>
    %cst_142 = arith.constant 1.000000e+00 : f32
    %445 = vector.broadcast %cst_142 : f32 to vector<16x32xf32>
    %446 = arith.subf %444, %445 : vector<16x32xf32>
    %447 = arith.select %441, %439, %446 : vector<16x32xi1>, vector<16x32xf32>
    %448 = arith.addf %447, %243 : vector<16x32xf32>
    %c0_143 = arith.constant 0 : index
    %c0_144 = arith.constant 0 : index
    %449 = vector.load %arg18[%c0_143, %c0_144] : memref<1x32xf32, #tpu.memory_space<vmem>>, vector<1x32xf32>
    %c0_145 = arith.constant 0 : index
    %c0_146 = arith.constant 0 : index
    %450 = vector.load %arg19[%c0_145, %c0_146] : memref<1x32xf32, #tpu.memory_space<vmem>>, vector<1x32xf32>
    %cst_147 = arith.constant dense<0.000000e+00> : vector<16xf32>
    %451 = vector.multi_reduction <add>, %448, %cst_147 [1] : vector<16x32xf32> to vector<16xf32>
    %452 = vector.shape_cast %451 : vector<16xf32> to vector<16x1xf32>
    %cst_148 = arith.constant 3.200000e+01 : f32
    %453 = vector.broadcast %cst_148 : f32 to vector<16x1xf32>
    %454 = arith.divf %452, %453 : vector<16x1xf32>
    %455 = vector.broadcast %454 : vector<16x1xf32> to vector<16x32xf32>
    %456 = arith.subf %448, %455 : vector<16x32xf32>
    %457 = arith.mulf %456, %456 : vector<16x32xf32>
    %cst_149 = arith.constant dense<0.000000e+00> : vector<16xf32>
    %458 = vector.multi_reduction <add>, %457, %cst_149 [1] : vector<16x32xf32> to vector<16xf32>
    %459 = vector.shape_cast %458 : vector<16xf32> to vector<16x1xf32>
    %cst_150 = arith.constant 3.200000e+01 : f32
    %460 = vector.broadcast %cst_150 : f32 to vector<16x1xf32>
    %461 = arith.divf %459, %460 : vector<16x1xf32>
    %462 = vector.broadcast %454 : vector<16x1xf32> to vector<16x32xf32>
    %463 = arith.subf %448, %462 : vector<16x32xf32>
    %cst_151 = arith.constant 9.99999974E-6 : f32
    %464 = vector.broadcast %cst_151 : f32 to vector<16x1xf32>
    %465 = arith.addf %461, %464 : vector<16x1xf32>
    %466 = math.rsqrt %465 : vector<16x1xf32>
    %467 = vector.broadcast %466 : vector<16x1xf32> to vector<16x32xf32>
    %468 = arith.mulf %463, %467 : vector<16x32xf32>
    %469 = vector.broadcast %449 : vector<1x32xf32> to vector<16x32xf32>
    %470 = arith.mulf %468, %469 : vector<16x32xf32>
    %471 = vector.broadcast %450 : vector<1x32xf32> to vector<16x32xf32>
    %472 = arith.addf %470, %471 : vector<16x32xf32>
    %473 = tpu.iota {dimensions = array<i32: 1>} : vector<1x16xi32>
    %c2_i32 = arith.constant 2 : i32
    %474 = arith.muli %arg0, %c2_i32 : i32
    %c0_i32 = arith.constant 0 : i32
    %475 = arith.addi %474, %c0_i32 : i32
    %476 = arith.index_cast %475 : i32 to index
    %477 = memref.load %arg1[%476] : memref<4xi32, #tpu.memory_space<smem>>
    %c0_i32_152 = arith.constant 0 : i32
    %478 = arith.addi %477, %c0_i32_152 : i32
    %479 = vector.broadcast %478 : i32 to vector<1x16xi32>
    %480 = arith.cmpi eq, %473, %479 : vector<1x16xi32>
    %481 = arith.extui %480 : vector<1x16xi1> to vector<1x16xi32>
    %482 = arith.sitofp %481 : vector<1x16xi32> to vector<1x16xf32>
    %c2_i32_153 = arith.constant 2 : i32
    %483 = arith.muli %arg0, %c2_i32_153 : i32
    %c1_i32 = arith.constant 1 : i32
    %484 = arith.addi %483, %c1_i32 : i32
    %485 = arith.index_cast %484 : i32 to index
    %486 = memref.load %arg1[%485] : memref<4xi32, #tpu.memory_space<smem>>
    %c8_i32 = arith.constant 8 : i32
    %487 = arith.addi %486, %c8_i32 : i32
    %488 = vector.broadcast %487 : i32 to vector<1x16xi32>
    %489 = arith.cmpi eq, %473, %488 : vector<1x16xi32>
    %490 = arith.extui %489 : vector<1x16xi1> to vector<1x16xi32>
    %491 = arith.sitofp %490 : vector<1x16xi32> to vector<1x16xf32>
    %492 = tpu.concatenate %482, %491 in 0 : vector<1x16xf32>, vector<1x16xf32> -> vector<2x16xf32>
    %cst_154 = arith.constant dense<0.000000e+00> : vector<2x32xf32>
    %493 = tpu.matmul %492, %472, %cst_154 {dimension_numbers = #tpu.dot_dimension_numbers<[1], [0], [0], [1], [0, 0, 1, 1], [], []>} : vector<2x16xf32>, vector<16x32xf32>, vector<2x32xf32> -> vector<2x32xf32>
    %c0_155 = arith.constant 0 : index
    %c0_156 = arith.constant 0 : index
    %494 = vector.load %arg20[%c0_155, %c0_156] : memref<32x16xf32, #tpu.memory_space<vmem>>, vector<32x16xf32>
    %cst_157 = arith.constant dense<0.000000e+00> : vector<2x16xf32>
    %495 = tpu.matmul %493, %494, %cst_157 {dimension_numbers = #tpu.dot_dimension_numbers<[1], [0], [0], [1], [0, 0, 1, 1], [], []>} : vector<2x32xf32>, vector<32x16xf32>, vector<2x16xf32> -> vector<2x16xf32>
    %c0_158 = arith.constant 0 : index
    %c0_159 = arith.constant 0 : index
    %496 = vector.load %arg21[%c0_158, %c0_159] : memref<1x16xf32, #tpu.memory_space<vmem>>, vector<1x16xf32>
    %497 = vector.broadcast %496 : vector<1x16xf32> to vector<2x16xf32>
    %498 = arith.addf %495, %497 : vector<2x16xf32>
    %cst_160 = arith.constant 0.000000e+00 : f32
    %499 = vector.broadcast %cst_160 : f32 to vector<2x16xf32>
    %500 = arith.cmpf ogt, %498, %499 : vector<2x16xf32>
    %cst_161 = arith.constant 0.000000e+00 : f32
    %501 = vector.broadcast %cst_161 : f32 to vector<2x16xf32>
    %502 = arith.minimumf %498, %501 : vector<2x16xf32>
    %503 = math.exp %502 : vector<2x16xf32>
    %cst_162 = arith.constant 1.000000e+00 : f32
    %504 = vector.broadcast %cst_162 : f32 to vector<2x16xf32>
    %505 = arith.subf %503, %504 : vector<2x16xf32>
    %506 = arith.select %500, %498, %505 : vector<2x16xi1>, vector<2x16xf32>
    %c0_163 = arith.constant 0 : index
    %c0_164 = arith.constant 0 : index
    %507 = vector.load %arg22[%c0_163, %c0_164] : memref<16x8xf32, #tpu.memory_space<vmem>>, vector<16x8xf32>
    %cst_165 = arith.constant dense<0.000000e+00> : vector<2x8xf32>
    %508 = tpu.matmul %506, %507, %cst_165 {dimension_numbers = #tpu.dot_dimension_numbers<[1], [0], [0], [1], [0, 0, 1, 1], [], []>} : vector<2x16xf32>, vector<16x8xf32>, vector<2x8xf32> -> vector<2x8xf32>
    %c0_166 = arith.constant 0 : index
    %c0_167 = arith.constant 0 : index
    %509 = vector.load %arg23[%c0_166, %c0_167] : memref<1x8xf32, #tpu.memory_space<vmem>>, vector<1x8xf32>
    %510 = vector.broadcast %509 : vector<1x8xf32> to vector<2x8xf32>
    %511 = arith.addf %508, %510 : vector<2x8xf32>
    %cst_168 = arith.constant 0.000000e+00 : f32
    %512 = vector.broadcast %cst_168 : f32 to vector<2x8xf32>
    %513 = arith.cmpf ogt, %511, %512 : vector<2x8xf32>
    %cst_169 = arith.constant 0.000000e+00 : f32
    %514 = vector.broadcast %cst_169 : f32 to vector<2x8xf32>
    %515 = arith.minimumf %511, %514 : vector<2x8xf32>
    %516 = math.exp %515 : vector<2x8xf32>
    %cst_170 = arith.constant 1.000000e+00 : f32
    %517 = vector.broadcast %cst_170 : f32 to vector<2x8xf32>
    %518 = arith.subf %516, %517 : vector<2x8xf32>
    %519 = arith.select %513, %511, %518 : vector<2x8xi1>, vector<2x8xf32>
    %cst_171 = arith.constant 1999853.38 : f32
    %520 = vector.broadcast %cst_171 : f32 to vector<2x8xf32>
    %521 = arith.mulf %519, %520 : vector<2x8xf32>
    %c0_172 = arith.constant 0 : index
    %c0_173 = arith.constant 0 : index
    %c0_174 = arith.constant 0 : index
    %522 = vector.load %arg24[%c0_172, %c0_173, %c0_174] : memref<1x2x8xf32, #tpu.memory_space<vmem>>, vector<1x2x8xf32>
    %523 = vector.shape_cast %522 : vector<1x2x8xf32> to vector<2x8xf32>
    %524 = vector.shape_cast %521 : vector<2x8xf32> to vector<1x2x8xf32>
    tpu.vector_store %arg24[%c0_172, %c0_173, %c0_174], %524 {strides = array<i32>} : memref<1x2x8xf32, #tpu.memory_space<vmem>>, vector<1x2x8xf32>,
    return
  }
  func.func @transform_0(%arg0: i32, %arg1: memref<4xi32, #tpu.memory_space<smem>>) -> (i32, i32, i32) {
    %c0_i32 = arith.constant 0 : i32
    %c0_i32_0 = arith.constant 0 : i32
    %c0_i32_1 = arith.constant 0 : i32
    return %arg0, %c0_i32, %c0_i32_0 : i32, i32, i32
  }
  func.func @transform_1(%arg0: i32, %arg1: memref<4xi32, #tpu.memory_space<smem>>) -> (i32, i32, i32) {
    %c0_i32 = arith.constant 0 : i32
    %c0_i32_0 = arith.constant 0 : i32
    %c0_i32_1 = arith.constant 0 : i32
    return %arg0, %c0_i32, %c0_i32_0 : i32, i32, i32
  }
  func.func @transform_2(%arg0: i32, %arg1: memref<4xi32, #tpu.memory_space<smem>>) -> (i32, i32) {
    %c0_i32 = arith.constant 0 : i32
    %c0_i32_0 = arith.constant 0 : i32
    %c0_i32_1 = arith.constant 0 : i32
    return %c0_i32, %c0_i32_0 : i32, i32
  }
  func.func @transform_3(%arg0: i32, %arg1: memref<4xi32, #tpu.memory_space<smem>>) -> (i32, i32) {
    %c0_i32 = arith.constant 0 : i32
    %c0_i32_0 = arith.constant 0 : i32
    %c0_i32_1 = arith.constant 0 : i32
    return %c0_i32, %c0_i32_0 : i32, i32
  }
  func.func @transform_4(%arg0: i32, %arg1: memref<4xi32, #tpu.memory_space<smem>>) -> (i32, i32) {
    %c0_i32 = arith.constant 0 : i32
    %c0_i32_0 = arith.constant 0 : i32
    %c0_i32_1 = arith.constant 0 : i32
    return %c0_i32, %c0_i32_0 : i32, i32
  }
  func.func @transform_5(%arg0: i32, %arg1: memref<4xi32, #tpu.memory_space<smem>>) -> (i32, i32) {
    %c0_i32 = arith.constant 0 : i32
    %c0_i32_0 = arith.constant 0 : i32
    %c0_i32_1 = arith.constant 0 : i32
    return %c0_i32, %c0_i32_0 : i32, i32
  }
  func.func @transform_6(%arg0: i32, %arg1: memref<4xi32, #tpu.memory_space<smem>>) -> (i32, i32) {
    %c0_i32 = arith.constant 0 : i32
    %c0_i32_0 = arith.constant 0 : i32
    %c0_i32_1 = arith.constant 0 : i32
    return %c0_i32, %c0_i32_0 : i32, i32
  }
  func.func @transform_7(%arg0: i32, %arg1: memref<4xi32, #tpu.memory_space<smem>>) -> (i32, i32) {
    %c0_i32 = arith.constant 0 : i32
    %c0_i32_0 = arith.constant 0 : i32
    %c0_i32_1 = arith.constant 0 : i32
    return %c0_i32, %c0_i32_0 : i32, i32
  }
  func.func @transform_8(%arg0: i32, %arg1: memref<4xi32, #tpu.memory_space<smem>>) -> (i32, i32) {
    %c0_i32 = arith.constant 0 : i32
    %c0_i32_0 = arith.constant 0 : i32
    %c0_i32_1 = arith.constant 0 : i32
    return %c0_i32, %c0_i32_0 : i32, i32
  }
  func.func @transform_9(%arg0: i32, %arg1: memref<4xi32, #tpu.memory_space<smem>>) -> (i32, i32) {
    %c0_i32 = arith.constant 0 : i32
    %c0_i32_0 = arith.constant 0 : i32
    %c0_i32_1 = arith.constant 0 : i32
    return %c0_i32, %c0_i32_0 : i32, i32
  }
  func.func @transform_10(%arg0: i32, %arg1: memref<4xi32, #tpu.memory_space<smem>>) -> (i32, i32) {
    %c0_i32 = arith.constant 0 : i32
    %c0_i32_0 = arith.constant 0 : i32
    %c0_i32_1 = arith.constant 0 : i32
    return %c0_i32, %c0_i32_0 : i32, i32
  }
  func.func @transform_11(%arg0: i32, %arg1: memref<4xi32, #tpu.memory_space<smem>>) -> (i32, i32) {
    %c0_i32 = arith.constant 0 : i32
    %c0_i32_0 = arith.constant 0 : i32
    %c0_i32_1 = arith.constant 0 : i32
    return %c0_i32, %c0_i32_0 : i32, i32
  }
  func.func @transform_12(%arg0: i32, %arg1: memref<4xi32, #tpu.memory_space<smem>>) -> (i32, i32) {
    %c0_i32 = arith.constant 0 : i32
    %c0_i32_0 = arith.constant 0 : i32
    %c0_i32_1 = arith.constant 0 : i32
    return %c0_i32, %c0_i32_0 : i32, i32
  }
  func.func @transform_13(%arg0: i32, %arg1: memref<4xi32, #tpu.memory_space<smem>>) -> (i32, i32) {
    %c0_i32 = arith.constant 0 : i32
    %c0_i32_0 = arith.constant 0 : i32
    %c0_i32_1 = arith.constant 0 : i32
    return %c0_i32, %c0_i32_0 : i32, i32
  }
  func.func @transform_14(%arg0: i32, %arg1: memref<4xi32, #tpu.memory_space<smem>>) -> (i32, i32) {
    %c0_i32 = arith.constant 0 : i32
    %c0_i32_0 = arith.constant 0 : i32
    %c0_i32_1 = arith.constant 0 : i32
    return %c0_i32, %c0_i32_0 : i32, i32
  }
  func.func @transform_15(%arg0: i32, %arg1: memref<4xi32, #tpu.memory_space<smem>>) -> (i32, i32) {
    %c0_i32 = arith.constant 0 : i32
    %c0_i32_0 = arith.constant 0 : i32
    %c0_i32_1 = arith.constant 0 : i32
    return %c0_i32, %c0_i32_0 : i32, i32
  }
  func.func @transform_16(%arg0: i32, %arg1: memref<4xi32, #tpu.memory_space<smem>>) -> (i32, i32) {
    %c0_i32 = arith.constant 0 : i32
    %c0_i32_0 = arith.constant 0 : i32
    %c0_i32_1 = arith.constant 0 : i32
    return %c0_i32, %c0_i32_0 : i32, i32
  }
  func.func @transform_17(%arg0: i32, %arg1: memref<4xi32, #tpu.memory_space<smem>>) -> (i32, i32) {
    %c0_i32 = arith.constant 0 : i32
    %c0_i32_0 = arith.constant 0 : i32
    %c0_i32_1 = arith.constant 0 : i32
    return %c0_i32, %c0_i32_0 : i32, i32
  }
  func.func @transform_18(%arg0: i32, %arg1: memref<4xi32, #tpu.memory_space<smem>>) -> (i32, i32) {
    %c0_i32 = arith.constant 0 : i32
    %c0_i32_0 = arith.constant 0 : i32
    %c0_i32_1 = arith.constant 0 : i32
    return %c0_i32, %c0_i32_0 : i32, i32
  }
  func.func @transform_19(%arg0: i32, %arg1: memref<4xi32, #tpu.memory_space<smem>>) -> (i32, i32) {
    %c0_i32 = arith.constant 0 : i32
    %c0_i32_0 = arith.constant 0 : i32
    %c0_i32_1 = arith.constant 0 : i32
    return %c0_i32, %c0_i32_0 : i32, i32
  }
  func.func @transform_20(%arg0: i32, %arg1: memref<4xi32, #tpu.memory_space<smem>>) -> (i32, i32) {
    %c0_i32 = arith.constant 0 : i32
    %c0_i32_0 = arith.constant 0 : i32
    %c0_i32_1 = arith.constant 0 : i32
    return %c0_i32, %c0_i32_0 : i32, i32
  }
  func.func @transform_21(%arg0: i32, %arg1: memref<4xi32, #tpu.memory_space<smem>>) -> (i32, i32) {
    %c0_i32 = arith.constant 0 : i32
    %c0_i32_0 = arith.constant 0 : i32
    %c0_i32_1 = arith.constant 0 : i32
    return %c0_i32, %c0_i32_0 : i32, i32
  }
  func.func @transform_22(%arg0: i32, %arg1: memref<4xi32, #tpu.memory_space<smem>>) -> (i32, i32, i32) {
    %c0_i32 = arith.constant 0 : i32
    %c0_i32_0 = arith.constant 0 : i32
    %c0_i32_1 = arith.constant 0 : i32
    return %arg0, %c0_i32, %c0_i32_0 : i32, i32, i32
  }
}

</mosaic_0001>

<bundles_post_ra>
// kernel: tpu_custom_call.1
= control target key start
LH: loop header
LB: loop body
LE: loop exit
PB: predicated region body
PF: predicated region fallthrough
CT: control target
= control target key end

     0   :  { %s5195_s0 = inlined_call_operand.vmem [shape: s32[4], index: 0, kind: input, shape index: {}]   ;;  %s5196_s1 = inlined_call_operand.vmem [shape: f32[4,8,8], index: 1, kind: input, shape index: {}]   ;;  %s5197_s2 = inlined_call_operand.vmem [shape: f32[4,8,8], index: 2, kind: input, shape index: {}]   ;;  %s5198_s3 = inlined_call_operand.vmem [shape: f32[8,32], index: 3, kind: input, shape index: {}]   ;;  %s5199_s4 = inlined_call_operand.vmem [shape: f32[1,32], index: 4, kind: input, shape index: {}]   ;;  %s5200_s5 = inlined_call_operand.vmem [shape: f32[32,64], index: 5, kind: input, shape index: {}]   ;;  %s5201_s6 = inlined_call_operand.vmem [shape: f32[64,4], index: 6, kind: input, shape index: {}]   ;;  %s5202_s7 = inlined_call_operand.vmem [shape: f32[4,64], index: 7, kind: input, shape index: {}]   ;;  %s5203_s8 = inlined_call_operand.vmem [shape: f32[64,32], index: 8, kind: input, shape index: {}]   ;;  %s5204_s9 = inlined_call_operand.vmem [shape: f32[1,32], index: 9, kind: input, shape index: {}]   ;;  %s5205_s10 = inlined_call_operand.vmem [shape: f32[1,32], index: 10, kind: input, shape index: {}]   ;;  %s5206_s11 = inlined_call_operand.vmem [shape: f32[1,32], index: 11, kind: input, shape index: {}]   ;;  %s5207_s12 = inlined_call_operand.vmem [shape: f32[32,64], index: 12, kind: input, shape index: {}]   ;;  %s5208_s13 = inlined_call_operand.vmem [shape: f32[64,4], index: 13, kind: input, shape index: {}]   ;;  %s5209_s14 = inlined_call_operand.vmem [shape: f32[4,64], index: 14, kind: input, shape index: {}]   ;;  %s5210_s15 = inlined_call_operand.vmem [shape: f32[64,32], index: 15, kind: input, shape index: {}]   ;;  %s5211_s16 = inlined_call_operand.vmem [shape: f32[1,32], index: 16, kind: input, shape index: {}]   ;;  %s5212_s17 = inlined_call_operand.vmem [shape: f32[1,32], index: 17, kind: input, shape index: {}]   ;;  %s5213_s18 = inlined_call_operand.vmem [shape: f32[1,32], index: 18, kind: input, shape index: {}]   ;;  %s5214_s19 = inlined_call_operand.vmem [shape: f32[32,16], index: 19, kind: input, shape index: {}]   ;;  %s5215_s20 = inlined_call_operand.vmem [shape: f32[1,16], index: 20, kind: input, shape index: {}]   ;;  %s5216_s21 = inlined_call_operand.vmem [shape: f32[16,8], index: 21, kind: input, shape index: {}]   ;;  %s5217_s22 = inlined_call_operand.vmem [shape: f32[1,8], index: 22, kind: input, shape index: {}]   ;;  %s5218_s23 = inlined_call_operand.hbm [shape: f32[2,2,8], index: 23, kind: output, shape index: {}]  }
   0x1   :  { %5237 = sst [smem:[#allocation14_spill]] %s5195_s0 }
   0x2   :  { %5238 = sst [smem:[#allocation15_spill]] %s5196_s1  ;;  %s5247_s24 = sld [smem:[#allocation14_spill]] }
   0x3   :  { %5239 = sst [smem:[#allocation16_spill]] %s5197_s2 }
   0x4   :  { %5240 = sst [smem:[#allocation17_spill]] %s5198_s3 }
   0x5   :  { %5241 = sst [smem:[#allocation18_spill]] %s5199_s4 }
   0x6   :  { %5242 = sst [smem:[#allocation19_spill]] %s5200_s5 }
   0x7   :  { %5243 = sst [smem:[#allocation20_spill]] %s5201_s6 }
   0x8   :  { %5244 = sst [smem:[#allocation21_spill]] %s5202_s7 }
   0x9   :  { %5245 = sst [smem:[#allocation22_spill]] %s5212_s17  ;;  %s28_s17 = sshll.u32 %s5247_s24, 4  ;;  %s29_s17 = int_to_ptr.vmem [resolvable:$true] %s28_s17 }
   0xa   :  { %5246 = sst [smem:[#allocation23_spill]] %s5218_s23  ;;  %s4314_s25 = scalar_lea.vmem %s29_s17, 16 }
   0xb   :  { %p4315_p0 = scmp.ne.s32.totalorder %s29_s17, %s4314_s25  ;;  %p4319_p1 = scmp.lt.s32.totalorder %s29_s17, %s29_s17 }
   0xc   :  { %p4320_p2 = scmp.lt.s32.totalorder %s4314_s25, %s4314_s25 }
   0xe   :  { %p4321_p3 = por %p4320_p2, %p4319_p1 }
  0x10   :  { %p4322_p4 = pnand %p4321_p3, %p4315_p0 }
  0x12   :  { %4325 = shalt.err (!%p4322_p4)  }
  0x13   :  { %s4392_s5 = smov [#allocation3]  }
  0x14   :  { %31 = dma.vmem_to_smem %s29_s17, 16, %s4392_s5, [#allocation2] }
  0x15   :  { %4370 = dma.done.wait [#allocation2], 16 }
  0x16   :  { %4371 = vsyncadd [#allocation2], 4294967280 }
  0x17   :  { %33 = sfence }
  0x18   :  { %34 = vsyncpa [#allocation5], 0 }
  0x19   :  { %36 = vsyncpa [#allocation5 + $0x1], 0  ;;  %s4532_s1 = smov 0   ;;  %s4534_s26 = smov 0  }
  0x1a   :  { %s4536_s2 = smov 0   ;;  %s4538_s6 = smov 0  }
  0x1b LB: > { %5248 = sst [smem:[#allocation8_spill]] %s4378_s1  ;;  %s4553_s17 = sadd.s32 4294967295, %s4390_s6   ;;  %s4390_s6 = sphi %s4538_s6, %s5275_s6   ;;  %s4386_s2 = sphi %s4536_s2, %s5277_s2   ;;  %s4382_s26 = sphi %s4534_s26, %s5279_s26   ;;  %s4378_s1 = sphi %s4532_s1, %s5278_s1  }
  0x1c   : > { %5249 = sst [smem:[#allocation9_spill]] %s4386_s2  ;;  %s3658_s27 = sadd.s32 4294967294, %s4390_s6  }
  0x1d   : > { %5250 = sst [smem:[#allocation10_spill]] %s4390_s6  ;;  %s4557_s7 = sadd.s32 1, %s4390_s6  }
  0x1e   : > { %5251 = sst [smem:[#allocation11_spill]] %s4557_s7  ;;  %s521_s28 = sadd.s32 1, %s4386_s2 }
  0x1f   : > { %s518_s29 = ssub.s32 %s4390_s6, %s4557_s7  ;;  %p531_p5 = scmp.ne.s32.totalorder %s4386_s2, %s4382_s26 }
  0x20   : > { %p519_p6 = scmp.eq.s32.totalorder %s518_s29, 0  ;;  %p532_p7 = scmp.eq.s32.totalorder %s4553_s17, 1 }
  0x21   : > { %p537_p8 = scmp.ne.s32.totalorder %s4382_s26, %s4378_s1  ;;  %p538_p9 = scmp.eq.s32.totalorder %s3658_s27, 1 }
  0x22   : > { %s4568_s3 = scalar_select %p519_p6, %s4386_s2, %s521_s28  }
  0x23   : > { %p4570_p10 = por %p532_p7, %p531_p5  ;;  %p4574_p11 = por %p538_p9, %p537_p8 }
  0x24   : > { %5252 = sst [smem:[#allocation12_spill]] %s4568_s3  ;;  %p3661_p12 = scmp.ge.s32.totalorder %s4390_s6, 1 }
  0x25   : > { %s5254_s4 = scalar_select %p4574_p11, 1, 0 }
  0x26   : > { %p634_p13 = scmp.lt.s32.totalorder %s4390_s6, 3 }
  0x27   : > { %5255 = sst [smem:[#allocation13_spill]] %s5254_s4 }
  0x28   : > { %p635_p0 = pnand %p3661_p12, %p634_p13 }
  0x29   : > { %s5256_s25 = sld [smem:[#allocation17_spill]] (!%p635_p0)  ;;  %s4584_s5 = sshll.u32 (!%p635_p0), %s4553_s17, 1  ;;  %vm723_vm0 = vcmask (!%p635_p0), 64512   ;;  %vm821_vm1 = vcmask (!%p635_p0), 261120   ;;  %v4393_v36 = vmov (!%p635_p0), 0.0|0.0   ;;  %vm4394_vm4 = vmmov (!%p635_p0), 0  }
  0x2a   : > { %638 = sbr.rel (%p635_p0) target bundleno = 4984 (0x1378), region = 108  ;;  %p702_p1 = scmp.lt.s32.totalorder (!%p635_p0), %s4584_s5, 3  ;;  %v4395_v37 = vmov (!%p635_p0), 0.0   ;;  %v4396_v38 = vmov (!%p635_p0), 2   ;;  %v4397_v39 = vmov (!%p635_p0), 0   ;;  %vm911_vm5 = vcmask (!%p635_p0), 523264  }
  0x2b   : > { %s5257_s2 = sld [smem:[#allocation15_spill]] (!%p635_p0)  ;;  %s5258_s7 = sld [smem:[#allocation19_spill]] (!%p635_p0)  ;;  %4214 = vset.pattern.permute.xlu1 (!%p635_p0), %v4396_v38  ;;  %4212 = vset.pattern.permute.xlu0 (!%p635_p0), %v4397_v39  ;;  %vm4657_vm6 = vmpackc.low (!%p635_p0), %vm911_vm5, %vm911_vm5  ;;  %v4398_v47 = vmov (!%p635_p0), 3   ;;  %v4399_v48 = vmov (!%p635_p0), 1   ;;  %v1073_v52 = vlaneseq (!%p635_p0)  ;;  %vm1499_vm10 = vcmask (!%p635_p0), 130112  }
  0x2c   : > { %s5259_s24 = sld [smem:[#allocation20_spill]] (!%p635_p0)  ;;  %s5265_s6 = sld [smem:[#allocation16_spill]] (!%p635_p0) }
  0x2d   : > { %v4695_v53 = vshrl.u32 (!%p635_p0), %v1073_v52, 7  ;;  %s5231_s3 = smov (!%p635_p0), 80   ;;  %s5229_s29 = smov (!%p635_p0), 96  }
  0x2e   : > { %s5269_s4 = smov (!%p635_p0), 96  }
  0x2f   : > { %v715_v0 = vld [vmem:[%s5256_s25] sm:$0xff] (!%p635_p0)  ;;  %s4400_s25 = smov (!%p635_p0), 8   ;;  %v1075_v54 = vsub.s32 (!%p635_p0), 0, %v4695_v53  ;;  %v1272_v55 = vsub.s32 (!%p635_p0), 2, %v4695_v53  ;;  %v1372_v57 = vsub.s32 (!%p635_p0), 3, %v4695_v53  ;;  %v1172_v58 = vsub.s32 (!%p635_p0), 1, %v4695_v53 }
  0x30   : > { %3835 = vmatprep.subr.mxu0 (!%p635_p0), %v715_v0 }
  0x31   : > { %3836 = vmatpush3.msra.mxu0 %v715_v0  ;;  %s4588_s27 = scalar_select %p702_p1, %s4584_s5, 3  ;;  %v817_v3 = vld [vmem:[%s5258_s7] sm:$0xff]  ;;  %v818_v4 = vld [vmem:[%s5258_s7 + $0x8] sm:$0xff]  ;;  %v819_v5 = vld [vmem:[%s5258_s7 + $0x10] sm:$0xff] }
  0x32   : > { %v4057_v6 = vpack.c.bf16 %v818_v4, %v817_v3  ;;  %v820_v7 = vld [vmem:[%s5258_s7 + $0x18] sm:$0xff]  ;;  %v903_v9 = vld [vmem:[%s5259_s24] sm:$0xff]  ;;  %v904_v10 = vld [vmem:[%s5259_s24 + $0x8] sm:$0xff] }
  0x33   : > { %s5228_s28 = sshll.u32 %s4588_s27, 3  ;;  %v4061_v8 = vpack.c.bf16 %v820_v7, %v819_v5  ;;  %v905_v11 = vld [vmem:[%s5259_s24 + $0x10] sm:$0xff]  ;;  %v4065_v12 = vpack.c.bf16 %v904_v10, %v903_v9  ;;  %v906_v13 = vld [vmem:[%s5259_s24 + $0x18] sm:$0xff]  ;;  %v907_v15 = vld [vmem:[%s5259_s24 + $0x20] sm:$0xff]  ;;  %s5264_s1 = sshll.u32 %s4588_s27, 3 }
  0x34   : > { %s705_s30 = scalar_lea.vmem %s5257_s2, %s5228_s28  ;;  %4058 = vmatprep.subr.bf16.mxu1 %v4057_v6  ;;  %v4069_v14 = vpack.c.bf16 %v906_v13, %v905_v11  ;;  %v908_v16 = vld [vmem:[%s5259_s24 + $0x28] sm:$0xff]  ;;  %v909_v18 = vld [vmem:[%s5259_s24 + $0x30] sm:$0xff]  ;;  %v910_v19 = vld [vmem:[%s5259_s24 + $0x38] sm:$0xff]  ;;  %s5260_s2 = sld [smem:[#allocation18_spill]] }
  0x35   : > { %v713_v1 = vld [vmem:[%s705_s30] sm:$0xff]  ;;  %v714_v2 = vld [vmem:[%s705_s30 + $0x8] sm:$0xff]  ;;  %4060 = vmatpush3.bf16.msra.mxu1 %v4057_v6  ;;  %4066 = vmatprep.subr.bf16.mxu0 %v4065_v12  ;;  %v4073_v17 = vpack.c.bf16 %v908_v16, %v907_v15  ;;  %v4077_v20 = vpack.c.bf16 %v910_v19, %v909_v18  ;;  %s5263_s30 = sld [smem:[#allocation21_spill]]  ;;  %s4687_s28 = scalar_lea.vmem %s5265_s6, %s5264_s1 }
  0x36   : > { %3837 = vmatprep.mubr.msk.f32.mxu0 %vm723_vm0, %v713_v1  ;;  %4062 = vmatprep.subr.bf16.mxu1 %v4061_v8  ;;  %v3683_v49 = vld [vmem:[%s4687_s28 + $0x8] sm:$0xff]  ;;  %s5235_s27 = smov 120   ;;  %s4407_s1 = smov 48  }
  0x37   : > { %3838 = vmatmul.mubr.msk.f32.vlgmr.msra.gmra.mrb[0].mxu0 %vm723_vm0, %v714_v2  ;;  %s3305_s6 = sld [smem:[#allocation3 + %s4584_s5]] }
  0x38   : > { %4068 = vmatpush3.bf16.msra.mxu0 %v4065_v12 }
  0x39   : > { %4064 = vmatpush3.bf16.msra.mxu1 %v4061_v8  ;;  %4070 = vmatprep.subr.bf16.mxu0 %v4069_v14 }
  0x3a   : > { %v3667_v21 = vld [vmem:[%s5260_s2] ss:$0 sm:$0xff]  ;;  %4081 = vmatprep.subr.bf16.mxu1 %v4393_v36  ;;  %s5233_s2 = smov 112  }
  0x3b   : > { %v993_v44 = vld [vmem:[%s5263_s30] sm:$0xf]  ;;  %s4406_s30 = smov 16  }
  0x3c   : > { %4072 = vmatpush3.bf16.msra.mxu0 %v4069_v14 }
  0x3d   : > { %4074 = vmatprep.subr.bf16.mxu0 %v4073_v17 }
  0x40   : > { %4076 = vmatpush3.bf16.msra.mxu0 %v4073_v17 }
  0x41   : > { %4078 = vmatprep.subr.bf16.mxu0 %v4077_v20 }
  0x44   : > { %4080 = vmatpush3.bf16.msra.mxu0 %v4077_v20 }
  0x45   : > { %3882 = vmatprep.subr.mxu0 %v4395_v37 }
 0x10a   : > { %v3839_v22 = vpop.f32.mrb[0].mxu0 }
 0x10b   : > { %v802_v23 = vadd.f32 %v3839_v22, %v3667_v21  ;;  %v796_v24 = vpop.f32.mrb[1].mxu0 }
 0x10c   : > { %v797_v25 = vadd.f32 %v3667_v21, %v796_v24 }
 0x10d   : > { %v808_v26 = vmin.f32 %v802_v23, 0.0  ;;  %vm806_vm3 = vcmp.gt.f32.partialorder %v802_v23, 0.0 }
 0x10e   : > { %v807_v27 = vmin.f32 %v797_v25, 0.0  ;;  %vm805_vm2 = vcmp.gt.f32.partialorder %v797_v25, 0.0 }
 0x10f   : > { %v811_v28 = vmul.f32 1.442695, %v808_v26  ;;  %v4734_v26 = vld [vmem:[%s4687_s28] sm:$0xff] }
 0x110   : > { %v809_v29 = vmul.f32 1.442695, %v807_v27 }
 0x111   : > { %4226 = vpow2.f32 %v811_v28 }
 0x112   : > { %4228 = vpow2.f32 %v809_v29 }
 0x11b   : > { %v4227_v30 = vpop.eup %4226 }
 0x11c   : > { %v4229_v31 = vpop.eup %4228  ;;  %v3671_v32 = vadd.f32 -1.0, %v4227_v30 }
 0x11d   : > { %v3670_v33 = vadd.f32 -1.0, %v4229_v31 }
 0x11e   : > { %v4641_v35 = vsel %vm806_vm3, %v802_v23, %v3671_v32  ;;  %vm1481_vm3 = vcmask 392192  }
 0x11f   : > { %v4637_v34 = vsel %vm805_vm2, %v797_v25, %v3670_v33  ;;  %vm1478_vm2 = vcmask 130048  }
 0x120   : > { %3848 = vmatprep.mubr.msk.f32.mxu1 %vm821_vm1, %v4637_v34 }
 0x121   : > { %3849 = vmatmul.mubr.msk.f32.vlgmr.msra.gmra.mrb[0].mxu1 %vm821_vm1, %v4641_v35 }
 0x122   : > { %3874 = vmatprep.mubr.msk.f32.mxu1 %vm4394_vm4, %v4395_v37 }
 0x1f4   : > { %v4651_v40 = vpop.f32.mrb[0].mxu1 }
 0x1f5   : > { %v4653_v41 = vpop.f32.mrb[1].mxu1 }
 0x1f6   : > { %v4082_v43 = vpack.c.bf16 %v4651_v40, %v4653_v41  ;;  %3867 = vmatprep.mubr.msk.f32.mxu0 %vm911_vm5, %v4653_v41 }
 0x1f7   : > { %3868 = vmatmul.mubr.msk.f32.vlgmr.msra.gmra.mrb[2].mxu0 %vm911_vm5, %v4651_v40 }
 0x1f8   : > { %4084 = vmatpush3.bf16.xpose.msk.msra.mxu1 %vm4657_vm6, %v4082_v43  ;;  %3884 = vmatprep.mubr.msk.f32.mxu0 %vm4394_vm4, %v4395_v37 }
 0x1f9   : > { %3877 = vmatprep.subr.mxu1 %v4395_v37 }
 0x1ff   : > { %3875 = vmatmul.mubr.msk.f32.vlgmr.msra.gmra.mrb[2].mxu1 %vm911_vm5, %v993_v44 }
 0x200   : > { %3878 = vmatpush3.msra.mxu1 %v4653_v41  ;;  %3879 = vmatprep.mubr.msk.f32.mxu1 %vm4394_vm4, %v4395_v37 }
 0x201   : > { %3887 = vmatprep.subr.mxu1 %v4395_v37 }
 0x2ca   : > { %v3869_v45 = vpop.f32.mrb[2].mxu0 }
 0x2cb   : > { %1693 = vperm.xlu1 %4214, %v3869_v45   ;;  %1487 = vperm.xlu0 %4212, %v3869_v45   ;;  %v4680_v46 = vpop.f32.mrb[3].mxu0 }
 0x2cf   : > { %4215 = vset.pattern.permute.xlu1 %v4398_v47  ;;  %4213 = vset.pattern.permute.xlu0 %v4399_v48 }
 0x2d0   : > { %1795 = vperm.xlu1 %4215, %v3869_v45   ;;  %1591 = vperm.xlu0 %4213, %v3869_v45  }
 0x2d2   : > { %v1063_v50 = vpop.f32.mrb[2].mxu1 }
 0x2d3   : > { %v3876_v51 = vpop.f32.mrb[3].mxu1  ;;  %v1076_v56 = vrot.slane %v1063_v50, %v1075_v54  ;;  %v4705_v59 = vrot.slane %v1063_v50, %v1272_v55  ;;  %v4709_v63 = vrot.slane %v1063_v50, %v1372_v57  ;;  %v4713_v0 = vrot.slane %v1063_v50, %v1172_v58 }
 0x2d4   : > { %1495 = vrot.lane.b32.xlu1 %v3683_v49, %s4400_s25 }
 0x2d5   : > { %4216 = vset.pattern.permute.xlu1 %v4397_v39 }
 0x2d8   : > { %1070 = vperm.xlu1 %4216, %v4680_v46  }
 0x2dc   : > { %4217 = vset.pattern.permute.xlu1 %v4396_v38 }
 0x34a   : > { %v1694_v60 = vpop.permute.xlu1 %1693  ;;  %v1488_v61 = vpop.permute.xlu0 %1487 }
 0x34b   : > { %v1490_v62 = vadd.f32 %v1488_v61, %v1076_v56  ;;  %v1696_v1 = vadd.f32 %v1694_v60, %v4705_v59 }
 0x34d   : > { %v1492_v2 = vmul.f32 0.2, %v1490_v62  ;;  %vm1491_vm7 = vcmp.gt.f32.partialorder %v1490_v62, 0.0  ;;  %v1698_v7 = vmul.f32 0.2, %v1696_v1  ;;  %vm1697_vm8 = vcmp.gt.f32.partialorder %v1696_v1, 0.0 }
 0x34f   : > { %v1796_v3 = vpop.permute.xlu1 %1795  ;;  %v1592_v4 = vpop.permute.xlu0 %1591  ;;  %v1493_v11 = vsel %vm1491_vm7, %v1490_v62, %v1492_v2  ;;  %v1699_v15 = vsel %vm1697_vm8, %v1696_v1, %v1698_v7 }
 0x350   : > { %v1798_v5 = vadd.f32 %v1796_v3, %v4709_v63  ;;  %v1594_v6 = vadd.f32 %v1592_v4, %v4713_v0 }
 0x352   : > { %vm1595_vm9 = vcmp.gt.f32.partialorder %v1594_v6, 0.0  ;;  %v1596_v8 = vmul.f32 0.2, %v1594_v6  ;;  %v1800_v9 = vmul.f32 0.2, %v1798_v5  ;;  %vm1799_vm11 = vcmp.gt.f32.partialorder %v1798_v5, 0.0 }
 0x353   : > { %v4718_v10 = vpop.permute.xlu1 %1495 }
 0x354   : > { %v1498_v12 = vadd.f32 %v4718_v10, %v1493_v11  ;;  %v1597_v13 = vsel %vm1595_vm9, %v1594_v6, %v1596_v8  ;;  %v1700_v17 = vadd.f32 %v1699_v15, %v4718_v10  ;;  %v1801_v19 = vsel %vm1799_vm11, %v1798_v5, %v1800_v9 }
 0x355   : > { %v1598_v14 = vadd.f32 %v1597_v13, %v4718_v10  ;;  %v1802_v21 = vadd.f32 %v1801_v19, %v4718_v10 }
 0x356   : > { %v1500_v16 = vsel %vm1499_vm10, %v1498_v12, -inf  ;;  %v1701_v20 = vsel %vm1499_vm10, %v1700_v17, -inf }
 0x357   : > { %1501 = vmax.xlane.f32.xlu0 %v1500_v16  ;;  %v1599_v18 = vsel %vm1499_vm10, %v1598_v14, -inf  ;;  %v1803_v22 = vsel %vm1499_vm10, %v1802_v21, -inf  ;;  %v1071_v23 = vpop.permute.xlu1 %1070 }
 0x358   : > { %1600 = vmax.xlane.f32.xlu1 %v1599_v18  ;;  %v1077_v24 = vadd.f32 %v1076_v56, %v1071_v23 }
 0x35a   : > { %v1079_v25 = vmul.f32 0.2, %v1077_v24  ;;  %vm1078_vm12 = vcmp.gt.f32.partialorder %v1077_v24, 0.0 }
 0x35b   : > { %1702 = vmax.xlane.f32.xlu0 %v1701_v20 }
 0x35c   : > { %v1080_v27 = vsel %vm1078_vm12, %v1077_v24, %v1079_v25 }
 0x35d   : > { %v1081_v28 = vadd.f32 %v1080_v27, %v4734_v26 }
 0x35f   : > { %1804 = vmax.xlane.f32.xlu0 %v1803_v22  ;;  %v1082_v29 = vsel %vm723_vm0, %v1081_v28, -inf }
 0x369   : > { %1267 = vperm.xlu1 %4217, %v4680_v46  }
 0x36d   : > { %4218 = vset.pattern.permute.xlu1 %v4398_v47 }
 0x36e   : > { %1367 = vperm.xlu1 %4218, %v4680_v46  }
 0x372   : > { %4219 = vset.pattern.permute.xlu1 %v4397_v39 }
 0x375   : > { %1167 = vperm.xlu0 %4213, %v4680_v46  }
 0x394   : > { %1083 = vmax.xlane.f32.xlu0 %v1082_v29 }
 0x3e4   : > { %v1502_v30 = vpop.xlane.xlu0 %1501 }
 0x3e5   : > { %v1503_v31 = vsub.f32 %v1498_v12, %v1502_v30  ;;  %v1601_v32 = vpop.xlane.xlu1 %1600 }
 0x3e6   : > { %v1602_v33 = vsub.f32 %v1598_v14, %v1601_v32 }
 0x3e7   : > { %v1504_v43 = vmul.f32 1.442695, %v1503_v31 }
 0x3e8   : > { %v1603_v44 = vmul.f32 1.442695, %v1602_v33  ;;  %v1703_v45 = vpop.xlane.xlu0 %1702 }
 0x3e9   : > { %4230 = vpow2.f32 %v1504_v43  ;;  %v1704_v46 = vsub.f32 %v1700_v17, %v1703_v45  ;;  %v1268_v1 = vpop.permute.xlu1 %1267 }
 0x3ea   : > { %4232 = vpow2.f32 %v1603_v44  ;;  %v1274_v2 = vadd.f32 %v4705_v59, %v1268_v1 }
 0x3eb   : > { %v1705_v48 = vmul.f32 1.442695, %v1704_v46 }
 0x3ec   : > { %v1805_v49 = vpop.xlane.xlu0 %1804  ;;  %v1276_v4 = vmul.f32 0.2, %v1274_v2  ;;  %vm1275_vm13 = vcmp.gt.f32.partialorder %v1274_v2, 0.0 }
 0x3ed   : > { %4234 = vpow2.f32 %v1705_v48  ;;  %v1806_v50 = vsub.f32 %v1802_v21, %v1805_v49  ;;  %v1368_v3 = vpop.permute.xlu1 %1367 }
 0x3ee   : > { %v1374_v5 = vadd.f32 %v4709_v63, %v1368_v3  ;;  %v1277_v8 = vsel %vm1275_vm13, %v1274_v2, %v1276_v4 }
 0x3ef   : > { %v1807_v51 = vmul.f32 1.442695, %v1806_v50  ;;  %v1278_v11 = vadd.f32 %v1277_v8, %v4734_v26 }
 0x3f0   : > { %v1376_v7 = vmul.f32 0.2, %v1374_v5  ;;  %vm1375_vm14 = vcmp.gt.f32.partialorder %v1374_v5, 0.0 }
 0x3f1   : > { %4236 = vpow2.f32 %v1807_v51  ;;  %v1279_v14 = vsel %vm723_vm0, %v1278_v11, -inf }
 0x3f2   : > { %v1377_v12 = vsel %vm1375_vm14, %v1374_v5, %v1376_v7 }
 0x3f3   : > { %v4738_v56 = vpop.eup %4230  ;;  %v1378_v59 = vadd.f32 %v1377_v12, %v4734_v26 }
 0x3f4   : > { %v4740_v60 = vpop.eup %4232  ;;  %1507 = vrot.lane.b32.xlu0 %v4738_v56, %s5235_s27  ;;  %v1168_v6 = vpop.permute.xlu0 %1167 }
 0x3f5   : > { %1606 = vrot.lane.b32.xlu1 %v4740_v60, %s5235_s27  ;;  %v1174_v9 = vadd.f32 %v4713_v0, %v1168_v6  ;;  %v1379_v63 = vsel %vm723_vm0, %v1378_v59, -inf }
 0x3f7   : > { %v4746_v61 = vpop.eup %4234  ;;  %v1176_v13 = vmul.f32 0.2, %v1174_v9  ;;  %vm1175_vm15 = vcmp.gt.f32.partialorder %v1174_v9, 0.0 }
 0x3f8   : > { %1708 = vrot.lane.b32.xlu0 %v4746_v61, %s5235_s27 }
 0x3f9   : > { %v1177_v15 = vsel %vm1175_vm15, %v1174_v9, %v1176_v13 }
 0x3fa   : > { %v1178_v16 = vadd.f32 %v1177_v15, %v4734_v26 }
 0x3fb   : > { %v4750_v62 = vpop.eup %4236 }
 0x3fc   : > { %1810 = vrot.lane.b32.xlu1 %v4750_v62, %s5235_s27  ;;  %v1179_v17 = vsel %vm723_vm0, %v1178_v16, -inf }
 0x417   : > { %1280 = vmax.xlane.f32.xlu0 %v1279_v14 }
 0x41b   : > { %1380 = vmax.xlane.f32.xlu0 %v1379_v63 }
 0x420   : > { %1180 = vmax.xlane.f32.xlu1 %v1179_v17 }
 0x421   : > { %v1084_v0 = vpop.xlane.xlu0 %1083 }
 0x422   : > { %v1085_v18 = vsub.f32 %v1081_v28, %v1084_v0 }
 0x424   : > { %v1086_v19 = vmul.f32 1.442695, %v1085_v18 }
 0x426   : > { %4238 = vpow2.f32 %v1086_v19 }
 0x430   : > { %v4239_v27 = vpop.eup %4238 }
 0x431   : > { %v1088_v30 = vsel %vm723_vm0, %v4239_v27, 0.0 }
 0x466   : > { %v1508_v20 = vpop.permute.xlu0 %1507 }
 0x467   : > { %v1607_v21 = vpop.permute.xlu1 %1606  ;;  %v1510_v22 = vsel %vm723_vm0, %v1508_v20, 0.0 }
 0x468   : > { %1511 = vadd.xlane.f32.xlu1 %v1510_v22  ;;  %v1609_v23 = vsel %vm723_vm0, %v1607_v21, 0.0 }
 0x469   : > { %1610 = vadd.xlane.f32.xlu0 %v1609_v23 }
 0x46a   : > { %v1709_v24 = vpop.permute.xlu0 %1708 }
 0x46b   : > { %v1711_v25 = vsel %vm723_vm0, %v1709_v24, 0.0 }
 0x46c   : > { %1712 = vadd.xlane.f32.xlu1 %v1711_v25 }
 0x46e   : > { %v1811_v29 = vpop.permute.xlu1 %1810 }
 0x46f   : > { %v1813_v28 = vsel %vm723_vm0, %v1811_v29, 0.0 }
 0x470   : > { %1089 = vadd.xlane.f32.xlu1 %v1088_v30  ;;  %1814 = vadd.xlane.f32.xlu0 %v1813_v28 }
 0x4a4   : > { %v1281_v31 = vpop.xlane.xlu0 %1280 }
 0x4a5   : > { %v1282_v32 = vsub.f32 %v1278_v11, %v1281_v31 }
 0x4a7   : > { %v1283_v33 = vmul.f32 1.442695, %v1282_v32 }
 0x4a8   : > { %v1381_v43 = vpop.xlane.xlu0 %1380 }
 0x4a9   : > { %4240 = vpow2.f32 %v1283_v33  ;;  %v1382_v44 = vsub.f32 %v1378_v59, %v1381_v43  ;;  %v1911_v43 = vld [vmem:[%s5203_s8] sm:$0xff] }
 0x4ab   : > { %v1383_v48 = vmul.f32 1.442695, %v1382_v44  ;;  %v1912_v44 = vld [vmem:[%s5203_s8 + $0x8] sm:$0xff] }
 0x4ad   : > { %v1181_v45 = vpop.xlane.xlu1 %1180 }
 0x4ae   : > { %v1182_v46 = vsub.f32 %v1178_v16, %v1181_v45  ;;  %v1913_v45 = vld [vmem:[%s5203_s8 + $0x10] sm:$0xff] }
 0x4b0   : > { %v1183_v49 = vmul.f32 1.442695, %v1182_v46  ;;  %v4085_v46 = vpack.c.bf16 %v1912_v44, %v1911_v43 }
 0x4b2   : > { %4242 = vpow2.f32 %v1183_v49 }
 0x4b3   : > { %v4241_v50 = vpop.eup %4240  ;;  %4244 = vpow2.f32 %v1383_v48  ;;  %v1914_v48 = vld [vmem:[%s5203_s8 + $0x18] sm:$0xff] }
 0x4b4   : > { %v1285_v51 = vsel %vm723_vm0, %v4241_v50, 0.0  ;;  %v4089_v49 = vpack.c.bf16 %v1914_v48, %v1913_v45 }
 0x4b5   : > { %1286 = vadd.xlane.f32.xlu1 %v1285_v51 }
 0x4bc   : > { %v4243_v1 = vpop.eup %4242 }
 0x4bd   : > { %v1185_v2 = vsel %vm723_vm0, %v4243_v1, 0.0  ;;  %v4770_v3 = vpop.eup %4244 }
 0x4be   : > { %1186 = vadd.xlane.f32.xlu0 %v1185_v2  ;;  %v1385_v4 = vsel %vm723_vm0, %v4770_v3, 0.0 }
 0x4c2   : > { %1386 = vadd.xlane.f32.xlu0 %v1385_v4 }
 0x4c6   : > { %1190 = vrot.lane.b32.xlu1 %v4653_v41, %s5233_s2 }
 0x4ca   : > { %1390 = vrot.lane.b32.xlu1 %v4653_v41, %s5231_s3 }
 0x4d8   : > { %1290 = vrot.lane.b32.xlu0 %v4653_v41, %s5229_s29 }
 0x4dc   : > { %1617 = vrot.lane.b32.xlu0 %v4651_v40, %s5233_s2  ;;  %s5267_s2 = smov 112  }
 0x4e0   : > { %1719 = vrot.lane.b32.xlu0 %v4651_v40, %s5229_s29  ;;  %s5268_s29 = smov 80  }
 0x4e4   : > { %1821 = vrot.lane.b32.xlu0 %v4651_v40, %s5231_s3  ;;  %s4405_s3 = smov 32  }
 0x4f5   : > { %v1512_v5 = vpop.xlane.xlu1 %1511 }
 0x4f6   : > { %4246 = vrcp.f32 %v1512_v5  ;;  %v1611_v6 = vpop.xlane.xlu0 %1610  ;;  %v1915_v5 = vld [vmem:[%s5203_s8 + $0x20] sm:$0xff] }
 0x4f7   : > { %4248 = vrcp.f32 %v1611_v6  ;;  %v1916_v6 = vld [vmem:[%s5203_s8 + $0x28] sm:$0xff] }
 0x4f9   : > { %v1713_v7 = vpop.xlane.xlu1 %1712 }
 0x4fa   : > { %4250 = vrcp.f32 %v1713_v7  ;;  %v4093_v7 = vpack.c.bf16 %v1916_v6, %v1915_v5 }
 0x4fd   : > { %v1815_v8 = vpop.xlane.xlu0 %1814  ;;  %v1090_v9 = vpop.xlane.xlu1 %1089 }
 0x4fe   : > { %4252 = vrcp.f32 %v1090_v9  ;;  %v1918_v9 = vld [vmem:[%s5203_s8 + $0x38] sm:$0xff] }
 0x4ff   : > { %4254 = vrcp.f32 %v1815_v8  ;;  %v1917_v8 = vld [vmem:[%s5203_s8 + $0x30] sm:$0xff] }
 0x500   : > { %v4247_v11 = vpop.eup %4246 }
 0x501   : > { %v1514_v41 = vmul.f32 %v4247_v11, %v4738_v56  ;;  %v4249_v12 = vpop.eup %4248  ;;  %v4097_v11 = vpack.c.bf16 %v1918_v9, %v1917_v8 }
 0x502   : > { %v1613_v13 = vmul.f32 %v4249_v12, %v4740_v60 }
 0x503   : > { %1516 = vrot.lane.b32.xlu1 %v1514_v41, %s5235_s27 }
 0x504   : > { %v4251_v14 = vpop.eup %4250 }
 0x505   : > { %v1715_v15 = vmul.f32 %v4251_v14, %v4746_v61 }
 0x507   : > { %1615 = vrot.lane.b32.xlu1 %v1613_v13, %s5235_s27 }
 0x508   : > { %v4253_v59 = vpop.eup %4252 }
 0x509   : > { %v4255_v63 = vpop.eup %4254  ;;  %v1092_v16 = vmul.f32 %v4253_v59, %v4239_v27 }
 0x50a   : > { %v1817_v17 = vmul.f32 %v4255_v63, %v4750_v62 }
 0x50b   : > { %1717 = vrot.lane.b32.xlu1 %v1715_v15, %s5235_s27  ;;  %3880 = vmatmul.mubr.msk.f32.vlgmr.msra.gmra.mrb[4].mxu1 %vm723_vm0, %v1092_v16 }
 0x50c   : > { %3889 = vmatprep.mubr.msk.f32.mxu1 %vm4394_vm4, %v4395_v37 }
 0x50f   : > { %1819 = vrot.lane.b32.xlu1 %v1817_v17, %s5235_s27  ;;  %s5266_s27 = smov 120  }
 0x542   : > { %v1287_v56 = vpop.xlane.xlu1 %1286 }
 0x543   : > { %4256 = vrcp.f32 %v1287_v56 }
 0x546   : > { %v1191_v60 = vpop.permute.xlu1 %1190 }
 0x547   : > { %3883 = vmatpush3.msra.mxu0 %v1191_v60 }
 0x548   : > { %3892 = vmatprep.subr.mxu0 %v4395_v37 }
 0x54a   : > { %v1391_v22 = vpop.permute.xlu1 %1390 }
 0x54b   : > { %v1187_v61 = vpop.xlane.xlu0 %1186 }
 0x54c   : > { %4258 = vrcp.f32 %v1187_v61 }
 0x54d   : > { %v4257_v18 = vpop.eup %4256 }
 0x54e   : > { %v1289_v19 = vmul.f32 %v4257_v18, %v4241_v50 }
 0x54f   : > { %v1387_v0 = vpop.xlane.xlu0 %1386 }
 0x550   : > { %4260 = vrcp.f32 %v1387_v0 }
 0x553   : > { %v1291_v20 = vpop.permute.xlu0 %1290 }
 0x554   : > { %3888 = vmatpush3.msra.mxu1 %v1291_v20 }
 0x555   : > { %3890 = vmatmul.mubr.msk.f32.vlgmr.msra.gmra.mrb[6].mxu1 %vm723_vm0, %v1289_v19  ;;  %3897 = vmatprep.subr.mxu1 %v4395_v37 }
 0x556   : > { %v4259_v62 = vpop.eup %4258  ;;  %3898 = vmatpush3.msra.mxu1 %v4651_v40  ;;  %3899 = vmatprep.mubr.msk.f32.mxu1 %vm4394_vm4, %v4395_v37 }
 0x557   : > { %v1189_v21 = vmul.f32 %v4259_v62, %v4243_v1  ;;  %3907 = vmatprep.subr.mxu1 %v4395_v37  ;;  %v1618_v25 = vpop.permute.xlu0 %1617 }
 0x559   : > { %3885 = vmatmul.mubr.msk.f32.vlgmr.msra.gmra.mrb[4].mxu0 %vm723_vm0, %v1189_v21 }
 0x55a   : > { %v4261_v23 = vpop.eup %4260  ;;  %3893 = vmatpush3.msra.mxu0 %v1391_v22  ;;  %3894 = vmatprep.mubr.msk.f32.mxu0 %vm4394_vm4, %v4395_v37 }
 0x55b   : > { %v1389_v24 = vmul.f32 %v4261_v23, %v4770_v3  ;;  %3902 = vmatprep.subr.mxu0 %v4395_v37  ;;  %v1720_v40 = vpop.permute.xlu0 %1719 }
 0x55d   : > { %3895 = vmatmul.mubr.msk.f32.vlgmr.msra.gmra.mrb[6].mxu0 %vm723_vm0, %v1389_v24  ;;  %v3688_v24 = vld [vmem:[%s5204_s9] ss:$0 sm:$0xff] }
 0x55e   : > { %3903 = vmatpush3.msra.mxu0 %v1618_v25  ;;  %3904 = vmatprep.mubr.msk.f32.mxu0 %vm4394_vm4, %v4395_v37 }
 0x55f   : > { %3912 = vmatprep.subr.mxu0 %v4395_v37  ;;  %v1822_v30 = vpop.permute.xlu0 %1821 }
 0x575   : > { %v1517_v27 = vpop.permute.xlu1 %1516 }
 0x576   : > { %3900 = vmatmul.mubr.msk.f32.vlgmr.msra.gmra.mrb[8].mxu1 %vm723_vm0, %v1517_v27 }
 0x577   : > { %3908 = vmatpush3.msra.mxu1 %v1720_v40  ;;  %3909 = vmatprep.mubr.msk.f32.mxu1 %vm4394_vm4, %v4395_v37 }
 0x578   : > { %4086 = vmatprep.subr.bf16.mxu1 %v4085_v46 }
 0x579   : > { %v1616_v29 = vpop.permute.xlu1 %1615 }
 0x57a   : > { %3905 = vmatmul.mubr.msk.f32.vlgmr.msra.gmra.mrb[8].mxu0 %vm723_vm0, %v1616_v29 }
 0x57b   : > { %3913 = vmatpush3.msra.mxu0 %v1822_v30  ;;  %3914 = vmatprep.mubr.msk.f32.mxu0 %vm4394_vm4, %v4395_v37 }
 0x57d   : > { %v1718_v28 = vpop.permute.xlu1 %1717 }
 0x57e   : > { %3910 = vmatmul.mubr.msk.f32.vlgmr.msra.gmra.mrb[10].mxu1 %vm723_vm0, %v1718_v28 }
 0x57f   : > { %4088 = vmatpush3.bf16.msra.mxu1 %v4085_v46 }
 0x580   : > { %4090 = vmatprep.subr.bf16.mxu1 %v4089_v49 }
 0x581   : > { %v1820_v31 = vpop.permute.xlu1 %1819 }
 0x582   : > { %3915 = vmatmul.mubr.msk.f32.vlgmr.msra.gmra.mrb[10].mxu0 %vm723_vm0, %v1820_v31 }
 0x583   : > { %4092 = vmatpush3.bf16.msra.mxu1 %v4089_v49 }
 0x584   : > { %4094 = vmatprep.subr.bf16.mxu1 %v4093_v7 }
 0x587   : > { %4096 = vmatpush3.bf16.msra.mxu1 %v4093_v7 }
 0x588   : > { %4098 = vmatprep.subr.bf16.mxu1 %v4097_v11 }
 0x58b   : > { %4100 = vmatpush3.bf16.msra.mxu1 %v4097_v11 }
 0x58c   : > { %4125 = vmatprep.subr.bf16.mxu1 %v4393_v36 }
 0x5de   : > { %v1162_v32 = vpop.f32.mrb[4].mxu1 }
 0x5df   : > { %v3881_v33 = vpop.f32.mrb[5].mxu1 }
 0x628   : > { %v1362_v50 = vpop.f32.mrb[6].mxu1 }
 0x629   : > { %1471 = vrot.lane.b32.xlu1 %v1362_v50, %s4405_s3  ;;  %v3891_v51 = vpop.f32.mrb[7].mxu1 }
 0x62c   : > { %v1262_v1 = vpop.f32.mrb[4].mxu0 }
 0x62d   : > { %1467 = vrot.lane.b32.xlu0 %v1262_v1, %s4406_s30  ;;  %v3886_v2 = vpop.f32.mrb[5].mxu0 }
 0x630   : > { %v1462_v3 = vpop.f32.mrb[6].mxu0 }
 0x631   : > { %1475 = vrot.lane.b32.xlu1 %v1462_v3, %s4407_s1  ;;  %v3896_v4 = vpop.f32.mrb[7].mxu0 }
 0x649   : > { %v1586_v41 = vpop.f32.mrb[8].mxu1 }
 0x64a   : > { %v3901_v12 = vpop.f32.mrb[9].mxu1 }
 0x64d   : > { %v1688_v13 = vpop.f32.mrb[8].mxu0 }
 0x64e   : > { %1897 = vrot.lane.b32.xlu0 %v1688_v13, %s4406_s30  ;;  %v3906_v14 = vpop.f32.mrb[9].mxu0  ;;  %v2068_v13 = vld [vmem:[%s5207_s12 + $0x10] sm:$0xff] }
 0x64f   : > { %v2069_v14 = vld [vmem:[%s5207_s12 + $0x18] sm:$0xff] }
 0x651   : > { %v1790_v59 = vpop.f32.mrb[10].mxu1 }
 0x652   : > { %1901 = vrot.lane.b32.xlu0 %v1790_v59, %s4405_s3  ;;  %v3911_v15 = vpop.f32.mrb[11].mxu1  ;;  %v4105_v59 = vpack.c.bf16 %v2069_v14, %v2068_v13 }
 0x653   : > { %v2151_v15 = vld [vmem:[%s5208_s13] sm:$0xff] }
 0x655   : > { %v1892_v63 = vpop.f32.mrb[10].mxu0 }
 0x656   : > { %1905 = vrot.lane.b32.xlu1 %v1892_v63, %s4407_s1  ;;  %v3916_v16 = vpop.f32.mrb[11].mxu0  ;;  %v2152_v63 = vld [vmem:[%s5208_s13 + $0x8] sm:$0xff] }
 0x657   : > { %v4109_v16 = vpack.c.bf16 %v2152_v63, %v2151_v15 }
 0x69b   : > { %v1472_v17 = vpop.permute.xlu1 %1471 }
 0x69f   : > { %v1468_v56 = vpop.permute.xlu0 %1467 }
 0x6a0   : > { %v1479_v60 = vsel %vm1478_vm2, %v1162_v32, %v1468_v56 }
 0x6a1   : > { %v1480_v61 = vsel %vm821_vm1, %v1479_v60, %v1472_v17 }
 0x6a3   : > { %v1476_v0 = vpop.permute.xlu1 %1475 }
 0x6a4   : > { %v1482_v18 = vsel %vm1481_vm3, %v1480_v61, %v1476_v0 }
 0x6a5   : > { %3933 = vmatprep.mubr.msk.f32.mxu1 %vm911_vm5, %v1482_v18 }
 0x6c0   : > { %v1898_v19 = vpop.permute.xlu0 %1897 }
 0x6c1   : > { %v1908_v62 = vsel %vm1478_vm2, %v1586_v41, %v1898_v19  ;;  %v2067_v41 = vld [vmem:[%s5207_s12 + $0x8] sm:$0xff] }
 0x6c4   : > { %v1902_v20 = vpop.permute.xlu0 %1901 }
 0x6c5   : > { %v1909_v21 = vsel %vm821_vm1, %v1908_v62, %v1902_v20  ;;  %v3693_v20 = vld [vmem:[%s5205_s10] ss:$0 sm:$0xff] }
 0x6c8   : > { %v1906_v22 = vpop.permute.xlu1 %1905 }
 0x6c9   : > { %v1910_v23 = vsel %vm1481_vm3, %v1909_v21, %v1906_v22  ;;  %v3694_v21 = vld [vmem:[%s5206_s11] ss:$0 sm:$0xff] }
 0x6ca   : > { %3934 = vmatmul.mubr.msk.f32.vlgmr.msra.gmra.mrb[12].mxu1 %vm911_vm5, %v1910_v23 }
 0x6cb   : > { %3970 = vmatprep.mubr.msk.f32.mxu1 %vm4394_vm4, %v4395_v37 }
 0x79d   : > { %v3935_v25 = vpop.f32.mrb[12].mxu1 }
 0x79e   : > { %v2004_v40 = vadd.f32 %v3935_v25, %v3688_v24  ;;  %v1998_v27 = vpop.f32.mrb[13].mxu1 }
 0x79f   : > { %v1999_v29 = vadd.f32 %v3688_v24, %v1998_v27  ;;  %v2154_v27 = vld [vmem:[%s5208_s13 + $0x18] sm:$0xff] }
 0x7a0   : > { %v2010_v30 = vmin.f32 %v2004_v40, 0.0  ;;  %vm2008_vm7 = vcmp.gt.f32.partialorder %v2004_v40, 0.0 }
 0x7a1   : > { %v2009_v28 = vmin.f32 %v1999_v29, 0.0  ;;  %vm2007_vm8 = vcmp.gt.f32.partialorder %v1999_v29, 0.0 }
 0x7a2   : > { %v2013_v31 = vmul.f32 1.442695, %v2010_v30 }
 0x7a3   : > { %v2011_v32 = vmul.f32 1.442695, %v2009_v28 }
 0x7a4   : > { %4262 = vpow2.f32 %v2013_v31  ;;  %v2155_v31 = vld [vmem:[%s5208_s13 + $0x20] sm:$0xff] }
 0x7a5   : > { %4264 = vpow2.f32 %v2011_v32  ;;  %v2156_v32 = vld [vmem:[%s5208_s13 + $0x28] sm:$0xff] }
 0x7ae   : > { %v4263_v33 = vpop.eup %4262 }
 0x7af   : > { %v4265_v43 = vpop.eup %4264  ;;  %v3692_v44 = vadd.f32 -1.0, %v4263_v33  ;;  %v4117_v33 = vpack.c.bf16 %v2156_v32, %v2155_v31 }
 0x7b0   : > { %v3691_v45 = vadd.f32 -1.0, %v4265_v43  ;;  %v2157_v43 = vld [vmem:[%s5208_s13 + $0x30] sm:$0xff] }
 0x7b1   : > { %v2018_v46 = vsel %vm2008_vm7, %v2004_v40, %v3692_v44  ;;  %v2153_v40 = vld [vmem:[%s5208_s13 + $0x10] sm:$0xff]  ;;  %v2158_v44 = vld [vmem:[%s5208_s13 + $0x38] sm:$0xff] }
 0x7b2   : > { %v2020_v48 = vadd.f32 %v2018_v46, %v4641_v35  ;;  %v2017_v49 = vsel %vm2007_vm8, %v1999_v29, %v3691_v45  ;;  %v4113_v28 = vpack.c.bf16 %v2154_v27, %v2153_v40  ;;  %v4121_v45 = vpack.c.bf16 %v2158_v44, %v2157_v43 }
 0x7b3   : > { %v2019_v50 = vadd.f32 %v2017_v49, %v4637_v34  ;;  %v2066_v34 = vld [vmem:[%s5207_s12] sm:$0xff]  ;;  %vm3317_vm8 = vcmask 1040384  }
 0x7b4   : > { %v2026_v51 = vsel %vm821_vm1, %v2020_v48, 0.0  ;;  %v4101_v12 = vpack.c.bf16 %v2067_v41, %v2066_v34 }
 0x7b5   : > { %2027 = vadd.xlane.f32.xlu1 %v2026_v51  ;;  %v2023_v1 = vsel %vm821_vm1, %v2019_v50, 0.0 }
 0x7b6   : > { %2024 = vadd.xlane.f32.xlu0 %v2023_v1  ;;  %4102 = vmatprep.subr.bf16.mxu0 %v4101_v12 }
 0x7b7   : > { %4104 = vmatpush3.bf16.msra.mxu0 %v4101_v12 }
 0x7b8   : > { %4106 = vmatprep.subr.bf16.mxu0 %v4105_v59 }
 0x7bb   : > { %4108 = vmatpush3.bf16.msra.mxu0 %v4105_v59 }
 0x7bc   : > { %4110 = vmatprep.subr.bf16.mxu0 %v4109_v16 }
 0x842   : > { %v2028_v2 = vpop.xlane.xlu1 %2027 }
 0x843   : > { %v2031_v3 = vmul.f32 0.03125, %v2028_v2  ;;  %v2025_v4 = vpop.xlane.xlu0 %2024 }
 0x844   : > { %v2030_v5 = vmul.f32 0.03125, %v2025_v4 }
 0x845   : > { %v2033_v6 = vsub.f32 %v2020_v48, %v2031_v3 }
 0x846   : > { %v2032_v7 = vsub.f32 %v2019_v50, %v2030_v5  ;;  %v2240_v50 = vld [vmem:[%s5209_s14] sm:$0xf] }
 0x847   : > { %v2035_v11 = vmul.f32 %v2033_v6, %v2033_v6 }
 0x848   : > { %v2034_v8 = vmul.f32 %v2032_v7, %v2032_v7 }
 0x849   : > { %v2039_v35 = vsel %vm821_vm1, %v2035_v11, 0.0 }
 0x84a   : > { %v2036_v9 = vsel %vm821_vm1, %v2034_v8, 0.0 }
 0x84b   : > { %2037 = vadd.xlane.f32.xlu0 %v2036_v9 }
 0x84f   : > { %2040 = vadd.xlane.f32.xlu0 %v2039_v35 }
 0x8d8   : > { %v2038_v17 = vpop.xlane.xlu0 %2037 }
 0x8d9   : > { %v2042_v56 = vmul.f32 0.03125, %v2038_v17 }
 0x8db   : > { %v2044_v60 = vadd.f32 1e-05, %v2042_v56 }
 0x8dc   : > { %v2041_v61 = vpop.xlane.xlu0 %2040 }
 0x8dd   : > { %4266 = vrsqrt.f32 %v2044_v60  ;;  %v2043_v0 = vmul.f32 0.03125, %v2041_v61 }
 0x8df   : > { %v2045_v18 = vadd.f32 1e-05, %v2043_v0 }
 0x8e1   : > { %4268 = vrsqrt.f32 %v2045_v18 }
 0x8e7   : > { %v4267_v19 = vpop.eup %4266 }
 0x8e8   : > { %v2048_v62 = vmul.f32 %v4267_v19, %v2032_v7 }
 0x8ea   : > { %v2056_v22 = vmul.f32 %v3693_v20, %v2048_v62 }
 0x8eb   : > { %v4269_v23 = vpop.eup %4268 }
 0x8ec   : > { %v2049_v24 = vmul.f32 %v4269_v23, %v2033_v6  ;;  %v4895_v25 = vadd.f32 %v3694_v21, %v2056_v22 }
 0x8ee   : > { %v2057_v29 = vmul.f32 %v3693_v20, %v2049_v24  ;;  %3944 = vmatprep.mubr.msk.f32.mxu0 %vm821_vm1, %v4895_v25 }
 0x8f0   : > { %v4905_v30 = vadd.f32 %v3694_v21, %v2057_v29 }
 0x8f2   : > { %3945 = vmatmul.mubr.msk.f32.vlgmr.msra.gmra.mrb[12].mxu0 %vm821_vm1, %v4905_v30 }
 0x8f3   : > { %4112 = vmatpush3.bf16.msra.mxu0 %v4109_v16 }
 0x8f4   : > { %4114 = vmatprep.subr.bf16.mxu0 %v4113_v28 }
 0x8f7   : > { %4116 = vmatpush3.bf16.msra.mxu0 %v4113_v28 }
 0x8f8   : > { %4118 = vmatprep.subr.bf16.mxu0 %v4117_v33 }
 0x8fb   : > { %4120 = vmatpush3.bf16.msra.mxu0 %v4117_v33 }
 0x8fc   : > { %4122 = vmatprep.subr.bf16.mxu0 %v4121_v45 }
 0x8ff   : > { %4124 = vmatpush3.bf16.msra.mxu0 %v4121_v45 }
 0x900   : > { %3978 = vmatprep.subr.mxu0 %v4395_v37 }
 0x9c5   : > { %v4922_v46 = vpop.f32.mrb[12].mxu0 }
 0x9c6   : > { %v4924_v48 = vpop.f32.mrb[13].mxu0 }
 0x9c7   : > { %v4126_v49 = vpack.c.bf16 %v4922_v46, %v4924_v48  ;;  %3963 = vmatprep.mubr.msk.f32.mxu0 %vm911_vm5, %v4924_v48 }
 0x9c8   : > { %3964 = vmatmul.mubr.msk.f32.vlgmr.msra.gmra.mrb[14].mxu0 %vm911_vm5, %v4922_v46 }
 0x9c9   : > { %4128 = vmatpush3.bf16.xpose.msk.msra.mxu1 %vm4657_vm6, %v4126_v49  ;;  %3980 = vmatprep.mubr.msk.f32.mxu0 %vm4394_vm4, %v4395_v37 }
 0x9ca   : > { %3973 = vmatprep.subr.mxu1 %v4395_v37 }
 0x9d0   : > { %3971 = vmatmul.mubr.msk.f32.vlgmr.msra.gmra.mrb[14].mxu1 %vm911_vm5, %v2240_v50 }
 0x9d1   : > { %3974 = vmatpush3.msra.mxu1 %v4924_v48  ;;  %3975 = vmatprep.mubr.msk.f32.mxu1 %vm4394_vm4, %v4395_v37 }
 0x9d2   : > { %3983 = vmatprep.subr.mxu1 %v4395_v37 }
 0xa9b   : > { %v3965_v42 = vpop.f32.mrb[14].mxu0 }
 0xa9c   : > { %2828 = vperm.xlu0 %4213, %v3965_v42   ;;  %2729 = vperm.xlu1 %4219, %v3965_v42   ;;  %v2231_v51 = vpop.f32.mrb[15].mxu0 }
 0xaa0   : > { %4220 = vset.pattern.permute.xlu1 %v4396_v38 }
 0xaa1   : > { %2930 = vperm.xlu1 %4220, %v3965_v42  }
 0xaa3   : > { %v2310_v1 = vpop.f32.mrb[14].mxu1 }
 0xaa4   : > { %v3972_v2 = vpop.f32.mrb[15].mxu1  ;;  %v4951_v3 = vrot.slane %v2310_v1, %v1172_v58  ;;  %v2322_v4 = vrot.slane %v2310_v1, %v1075_v54 }
 0xaa5   : > { %4221 = vset.pattern.permute.xlu1 %v4398_v47 }
 0xaa6   : > { %3032 = vperm.xlu1 %4221, %v3965_v42  }
 0xaaa   : > { %4222 = vset.pattern.permute.xlu1 %v4397_v39  ;;  %v4958_v39 = vrot.slane %v2310_v1, %v1272_v55  ;;  %v2619_v55 = vrot.slane %v2310_v1, %v1372_v57 }
 0xaab   : > { %2316 = vperm.xlu1 %4222, %v2231_v51  }
 0xaaf   : > { %4223 = vset.pattern.permute.xlu1 %v4396_v38 }
 0xb1b   : > { %v2829_v5 = vpop.permute.xlu0 %2828  ;;  %v2730_v6 = vpop.permute.xlu1 %2729 }
 0xb1c   : > { %v2831_v7 = vadd.f32 %v2829_v5, %v4951_v3  ;;  %v2732_v8 = vadd.f32 %v2730_v6, %v2322_v4 }
 0xb1e   : > { %vm2832_vm6 = vcmp.gt.f32.partialorder %v2831_v7, 0.0  ;;  %v2833_v9 = vmul.f32 0.2, %v2831_v7  ;;  %vm2733_vm9 = vcmp.gt.f32.partialorder %v2732_v8, 0.0  ;;  %v2734_v11 = vmul.f32 0.2, %v2732_v8 }
 0xb20   : > { %v2931_v38 = vpop.permute.xlu1 %2930  ;;  %v2735_v35 = vsel %vm2733_vm9, %v2732_v8, %v2734_v11  ;;  %v2834_v58 = vsel %vm2832_vm6, %v2831_v7, %v2833_v9 }
 0xb21   : > { %v2933_v34 = vadd.f32 %v2931_v38, %v4958_v39  ;;  %v2736_v54 = vadd.f32 %v2735_v35, %v4718_v10  ;;  %v2835_v41 = vadd.f32 %v2834_v58, %v4718_v10 }
 0xb23   : > { %vm2934_vm11 = vcmp.gt.f32.partialorder %v2933_v34, 0.0  ;;  %v2935_v12 = vmul.f32 0.2, %v2933_v34  ;;  %v2737_v13 = vsel %vm1499_vm10, %v2736_v54, -inf  ;;  %v2836_v14 = vsel %vm1499_vm10, %v2835_v41, -inf }
 0xb24   : > { %2738 = vmax.xlane.f32.xlu0 %v2737_v13  ;;  %2837 = vmax.xlane.f32.xlu1 %v2836_v14 }
 0xb25   : > { %v3033_v59 = vpop.permute.xlu1 %3032  ;;  %v2936_v15 = vsel %vm2934_vm11, %v2933_v34, %v2935_v12 }
 0xb26   : > { %v3035_v63 = vadd.f32 %v3033_v59, %v2619_v55  ;;  %v2937_v16 = vadd.f32 %v2936_v15, %v4718_v10 }
 0xb28   : > { %vm3036_vm12 = vcmp.gt.f32.partialorder %v3035_v63, 0.0  ;;  %v3037_v17 = vmul.f32 0.2, %v3035_v63  ;;  %v2938_v56 = vsel %vm1499_vm10, %v2937_v16, -inf }
 0xb29   : > { %2939 = vmax.xlane.f32.xlu0 %v2938_v56 }
 0xb2a   : > { %v3038_v60 = vsel %vm3036_vm12, %v3035_v63, %v3037_v17  ;;  %v2317_v53 = vpop.permute.xlu1 %2316 }
 0xb2b   : > { %v3039_v61 = vadd.f32 %v3038_v60, %v4718_v10  ;;  %v2323_v57 = vadd.f32 %v2322_v4, %v2317_v53 }
 0xb2d   : > { %v3040_v0 = vsel %vm1499_vm10, %v3039_v61, -inf  ;;  %v2325_v18 = vmul.f32 0.2, %v2323_v57  ;;  %vm2324_vm13 = vcmp.gt.f32.partialorder %v2323_v57, 0.0 }
 0xb2e   : > { %3041 = vmax.xlane.f32.xlu0 %v3040_v0 }
 0xb2f   : > { %v2326_v19 = vsel %vm2324_vm13, %v2323_v57, %v2325_v18 }
 0xb30   : > { %v2327_v20 = vadd.f32 %v2326_v19, %v4734_v26 }
 0xb32   : > { %v2328_v62 = vsel %vm723_vm0, %v2327_v20, -inf }
 0xb35   : > { %2513 = vperm.xlu1 %4223, %v2231_v51  }
 0xb39   : > { %4224 = vset.pattern.permute.xlu1 %v4398_v47 }
 0xb3a   : > { %2613 = vperm.xlu1 %4224, %v2231_v51  }
 0xb44   : > { %2413 = vperm.xlu0 %4213, %v2231_v51  }
 0xb48   : > { %4225 = vset.pattern.permute.xlu0 %v4398_v47 }
 0xb63   : > { %2329 = vmax.xlane.f32.xlu0 %v2328_v62 }
 0xbb1   : > { %v2739_v10 = vpop.xlane.xlu0 %2738  ;;  %v2838_v21 = vpop.xlane.xlu1 %2837 }
 0xbb2   : > { %v2740_v22 = vsub.f32 %v2736_v54, %v2739_v10  ;;  %v2839_v23 = vsub.f32 %v2835_v41, %v2838_v21 }
 0xbb4   : > { %v2741_v24 = vmul.f32 1.442695, %v2740_v22  ;;  %v2840_v40 = vmul.f32 1.442695, %v2839_v23 }
 0xbb5   : > { %v2514_v49 = vpop.permute.xlu1 %2513 }
 0xbb6   : > { %4270 = vpow2.f32 %v2741_v24  ;;  %v2940_v27 = vpop.xlane.xlu0 %2939  ;;  %v2520_v50 = vadd.f32 %v4958_v39, %v2514_v49 }
 0xbb7   : > { %4272 = vpow2.f32 %v2840_v40  ;;  %v2941_v47 = vsub.f32 %v2937_v16, %v2940_v27 }
 0xbb8   : > { %v2522_v51 = vmul.f32 0.2, %v2520_v50  ;;  %vm2521_vm10 = vcmp.gt.f32.partialorder %v2520_v50, 0.0 }
 0xbb9   : > { %v2942_v29 = vmul.f32 1.442695, %v2941_v47  ;;  %v2614_v42 = vpop.permute.xlu1 %2613 }
 0xbba   : > { %v2620_v1 = vadd.f32 %v2619_v55, %v2614_v42  ;;  %v2523_v5 = vsel %vm2521_vm10, %v2520_v50, %v2522_v51 }
 0xbbb   : > { %4274 = vpow2.f32 %v2942_v29  ;;  %v3042_v28 = vpop.xlane.xlu0 %3041  ;;  %v2524_v7 = vadd.f32 %v2523_v5, %v4734_v26 }
 0xbbc   : > { %v3043_v31 = vsub.f32 %v3039_v61, %v3042_v28  ;;  %v2622_v4 = vmul.f32 0.2, %v2620_v1  ;;  %vm2621_vm14 = vcmp.gt.f32.partialorder %v2620_v1, 0.0 }
 0xbbd   : > { %v2525_v11 = vsel %vm723_vm0, %v2524_v7, -inf }
 0xbbe   : > { %v3044_v32 = vmul.f32 1.442695, %v3043_v31  ;;  %v2623_v8 = vsel %vm2621_vm14, %v2620_v1, %v2622_v4 }
 0xbbf   : > { %v2624_v38 = vadd.f32 %v2623_v8, %v4734_v26 }
 0xbc0   : > { %v4975_v33 = vpop.eup %4270  ;;  %4276 = vpow2.f32 %v3044_v32 }
 0xbc1   : > { %v4977_v43 = vpop.eup %4272  ;;  %2744 = vrot.lane.b32.xlu0 %v4975_v33, %s5266_s27  ;;  %v2625_v35 = vsel %vm723_vm0, %v2624_v38, -inf }
 0xbc2   : > { %2843 = vrot.lane.b32.xlu1 %v4977_v43, %s5266_s27 }
 0xbc3   : > { %v2414_v2 = vpop.permute.xlu0 %2413 }
 0xbc4   : > { %v2420_v6 = vadd.f32 %v4951_v3, %v2414_v2 }
 0xbc5   : > { %v4983_v44 = vpop.eup %4274 }
 0xbc6   : > { %2945 = vrot.lane.b32.xlu0 %v4983_v44, %s5266_s27  ;;  %v2422_v9 = vmul.f32 0.2, %v2420_v6  ;;  %vm2421_vm15 = vcmp.gt.f32.partialorder %v2420_v6, 0.0 }
 0xbc8   : > { %v2423_v39 = vsel %vm2421_vm15, %v2420_v6, %v2422_v9 }
 0xbc9   : > { %v2424_v58 = vadd.f32 %v2423_v39, %v4734_v26 }
 0xbca   : > { %v4987_v45 = vpop.eup %4276 }
 0xbcb   : > { %3047 = vrot.lane.b32.xlu1 %v4987_v45, %s5266_s27  ;;  %v2425_v34 = vsel %vm723_vm0, %v2424_v58, -inf }
 0xbe5   : > { %2526 = vmax.xlane.f32.xlu0 %v2525_v11 }
 0xbe9   : > { %2626 = vmax.xlane.f32.xlu0 %v2625_v35 }
 0xbef   : > { %2426 = vmax.xlane.f32.xlu1 %v2425_v34 }
 0xbf0   : > { %v2330_v3 = vpop.xlane.xlu0 %2329 }
 0xbf1   : > { %v2331_v54 = vsub.f32 %v2327_v20, %v2330_v3 }
 0xbf3   : > { %v2332_v41 = vmul.f32 1.442695, %v2331_v54 }
 0xbf5   : > { %4278 = vpow2.f32 %v2332_v41 }
 0xbff   : > { %v4279_v63 = vpop.eup %4278 }
 0xc00   : > { %v2334_v16 = vsel %vm723_vm0, %v4279_v63, 0.0 }
 0xc33   : > { %v2745_v12 = vpop.permute.xlu0 %2744 }
 0xc34   : > { %v2844_v13 = vpop.permute.xlu1 %2843  ;;  %v2747_v14 = vsel %vm723_vm0, %v2745_v12, 0.0 }
 0xc35   : > { %2748 = vadd.xlane.f32.xlu1 %v2747_v14  ;;  %v2846_v55 = vsel %vm723_vm0, %v2844_v13, 0.0  ;;  %v3148_v14 = vld [vmem:[%s5210_s15] sm:$0xff] }
 0xc36   : > { %2847 = vadd.xlane.f32.xlu0 %v2846_v55  ;;  %v3149_v55 = vld [vmem:[%s5210_s15 + $0x8] sm:$0xff] }
 0xc38   : > { %v2946_v59 = vpop.permute.xlu0 %2945 }
 0xc39   : > { %v2948_v15 = vsel %vm723_vm0, %v2946_v59, 0.0  ;;  %v3150_v59 = vld [vmem:[%s5210_s15 + $0x10] sm:$0xff] }
 0xc3a   : > { %2949 = vadd.xlane.f32.xlu1 %v2948_v15  ;;  %v4129_v15 = vpack.c.bf16 %v3149_v55, %v3148_v14 }
 0xc3d   : > { %v3048_v26 = vpop.permute.xlu1 %3047 }
 0xc3e   : > { %2335 = vadd.xlane.f32.xlu1 %v2334_v16  ;;  %v3050_v17 = vsel %vm723_vm0, %v3048_v26, 0.0 }
 0xc3f   : > { %3051 = vadd.xlane.f32.xlu0 %v3050_v17 }
 0xc72   : > { %v2527_v56 = vpop.xlane.xlu0 %2526 }
 0xc73   : > { %v2528_v60 = vsub.f32 %v2524_v7, %v2527_v56 }
 0xc75   : > { %v2529_v61 = vmul.f32 1.442695, %v2528_v60 }
 0xc76   : > { %v2627_v0 = vpop.xlane.xlu0 %2626 }
 0xc77   : > { %4280 = vpow2.f32 %v2529_v61  ;;  %v2628_v53 = vsub.f32 %v2624_v38, %v2627_v0 }
 0xc79   : > { %v2629_v19 = vmul.f32 1.442695, %v2628_v53  ;;  %v3152_v53 = vld [vmem:[%s5210_s15 + $0x20] sm:$0xff] }
 0xc7c   : > { %v2427_v57 = vpop.xlane.xlu1 %2426 }
 0xc7d   : > { %v2428_v18 = vsub.f32 %v2424_v58, %v2427_v57  ;;  %v3153_v57 = vld [vmem:[%s5210_s15 + $0x28] sm:$0xff] }
 0xc7f   : > { %v2429_v20 = vmul.f32 1.442695, %v2428_v18  ;;  %v4137_v18 = vpack.c.bf16 %v3153_v57, %v3152_v53 }
 0xc81   : > { %v4281_v62 = vpop.eup %4280  ;;  %4282 = vpow2.f32 %v2429_v20  ;;  %v3155_v20 = vld [vmem:[%s5210_s15 + $0x38] sm:$0xff] }
 0xc82   : > { %v2531_v10 = vsel %vm723_vm0, %v4281_v62, 0.0  ;;  %4284 = vpow2.f32 %v2629_v19  ;;  %v3154_v19 = vld [vmem:[%s5210_s15 + $0x30] sm:$0xff] }
 0xc83   : > { %2532 = vadd.xlane.f32.xlu1 %v2531_v10 }
 0xc8b   : > { %v4283_v21 = vpop.eup %4282 }
 0xc8c   : > { %v2431_v22 = vsel %vm723_vm0, %v4283_v21, 0.0  ;;  %v4285_v23 = vpop.eup %4284 }
 0xc8d   : > { %2432 = vadd.xlane.f32.xlu0 %v2431_v22  ;;  %v2631_v24 = vsel %vm723_vm0, %v4285_v23, 0.0 }
 0xc91   : > { %2632 = vadd.xlane.f32.xlu0 %v2631_v24 }
 0xc94   : > { %2436 = vrot.lane.b32.xlu1 %v4924_v48, %s5267_s2 }
 0xc98   : > { %2636 = vrot.lane.b32.xlu1 %v4924_v48, %s5268_s29 }
 0xca7   : > { %2536 = vrot.lane.b32.xlu0 %v4924_v48, %s5269_s4 }
 0xcab   : > { %2854 = vrot.lane.b32.xlu0 %v4922_v46, %s5267_s2  ;;  %s5270_s2 = sld [smem:[#allocation22_spill]] }
 0xcaf   : > { %2956 = vrot.lane.b32.xlu0 %v4922_v46, %s5269_s4  ;;  %s5271_s4 = sld [smem:[#allocation23_spill]] }
 0xcb3   : > { %3058 = vrot.lane.b32.xlu0 %v4922_v46, %s5268_s29 }
 0xcc2   : > { %v2749_v40 = vpop.xlane.xlu1 %2748 }
 0xcc3   : > { %v2848_v27 = vpop.xlane.xlu0 %2847  ;;  %4286 = vrcp.f32 %v2749_v40 }
 0xcc4   : > { %4288 = vrcp.f32 %v2848_v27 }
 0xcc7   : > { %v2950_v47 = vpop.xlane.xlu1 %2949 }
 0xcc8   : > { %4290 = vrcp.f32 %v2950_v47 }
 0xccb   : > { %v2336_v29 = vpop.xlane.xlu1 %2335 }
 0xccc   : > { %4292 = vrcp.f32 %v2336_v29  ;;  %v3052_v28 = vpop.xlane.xlu0 %3051 }
 0xccd   : > { %v4287_v31 = vpop.eup %4286  ;;  %4294 = vrcp.f32 %v3052_v28 }
 0xcce   : > { %v2751_v48 = vmul.f32 %v4287_v31, %v4975_v33  ;;  %v4289_v32 = vpop.eup %4288 }
 0xccf   : > { %v2850_v49 = vmul.f32 %v4289_v32, %v4977_v43 }
 0xcd0   : > { %2753 = vrot.lane.b32.xlu1 %v2751_v48, %s5266_s27 }
 0xcd2   : > { %v4291_v50 = vpop.eup %4290 }
 0xcd3   : > { %v2952_v51 = vmul.f32 %v4291_v50, %v4983_v44 }
 0xcd4   : > { %2852 = vrot.lane.b32.xlu1 %v2850_v49, %s5266_s27 }
 0xcd6   : > { %v4293_v42 = vpop.eup %4292 }
 0xcd7   : > { %v4295_v1 = vpop.eup %4294  ;;  %v2338_v2 = vmul.f32 %v4293_v42, %v4279_v63  ;;  %v3151_v63 = vld [vmem:[%s5210_s15 + $0x18] sm:$0xff] }
 0xcd8   : > { %2954 = vrot.lane.b32.xlu1 %v2952_v51, %s5266_s27  ;;  %v3054_v4 = vmul.f32 %v4295_v1, %v4987_v45  ;;  %v4133_v26 = vpack.c.bf16 %v3151_v63, %v3150_v59 }
 0xcd9   : > { %3976 = vmatmul.mubr.msk.f32.vlgmr.msra.gmra.mrb[16].mxu1 %vm723_vm0, %v2338_v2 }
 0xcda   : > { %3985 = vmatprep.mubr.msk.f32.mxu1 %vm4394_vm4, %v4395_v37 }
 0xcdc   : > { %3056 = vrot.lane.b32.xlu1 %v3054_v4, %s5266_s27 }
 0xd10   : > { %v2533_v33 = vpop.xlane.xlu1 %2532 }
 0xd11   : > { %4296 = vrcp.f32 %v2533_v33  ;;  %v3710_v33 = vld [vmem:[%s5211_s16] ss:$0 sm:$0xff] }
 0xd14   : > { %v2437_v43 = vpop.permute.xlu1 %2436 }
 0xd15   : > { %3979 = vmatpush3.msra.mxu0 %v2437_v43 }
 0xd16   : > { %3988 = vmatprep.subr.mxu0 %v4395_v37 }
 0xd18   : > { %v2637_v11 = vpop.permute.xlu1 %2636 }
 0xd1a   : > { %v2433_v44 = vpop.xlane.xlu0 %2432 }
 0xd1b   : > { %4298 = vrcp.f32 %v2433_v44  ;;  %v4297_v6 = vpop.eup %4296 }
 0xd1c   : > { %v2535_v7 = vmul.f32 %v4297_v6, %v4281_v62  ;;  %v4141_v62 = vpack.c.bf16 %v3155_v20, %v3154_v19  ;;  %v3303_v19 = vand.u32 127, %v1073_v52  ;;  %v3392_v52 = vld [vmem:[%s5214_s19] sm:$0xff] }
 0xd1e   : > { %v2633_v5 = vpop.xlane.xlu0 %2632 }
 0xd1f   : > { %4300 = vrcp.f32 %v2633_v5 }
 0xd22   : > { %v2537_v8 = vpop.permute.xlu0 %2536 }
 0xd23   : > { %3984 = vmatpush3.msra.mxu1 %v2537_v8 }
 0xd24   : > { %3986 = vmatmul.mubr.msk.f32.vlgmr.msra.gmra.mrb[18].mxu1 %vm723_vm0, %v2535_v7  ;;  %3993 = vmatprep.subr.mxu1 %v4395_v37 }
 0xd25   : > { %v4299_v45 = vpop.eup %4298  ;;  %3994 = vmatpush3.msra.mxu1 %v4922_v46  ;;  %3995 = vmatprep.mubr.msk.f32.mxu1 %vm4394_vm4, %v4395_v37 }
 0xd26   : > { %v2435_v9 = vmul.f32 %v4299_v45, %v4283_v21  ;;  %4003 = vmatprep.subr.mxu1 %v4395_v37  ;;  %v2855_v35 = vpop.permute.xlu0 %2854 }
 0xd28   : > { %3981 = vmatmul.mubr.msk.f32.vlgmr.msra.gmra.mrb[16].mxu0 %vm723_vm0, %v2435_v9 }
 0xd29   : > { %v4301_v38 = vpop.eup %4300  ;;  %3989 = vmatpush3.msra.mxu0 %v2637_v11  ;;  %3990 = vmatprep.mubr.msk.f32.mxu0 %vm4394_vm4, %v4395_v37 }
 0xd2a   : > { %v2635_v39 = vmul.f32 %v4301_v38, %v4285_v23  ;;  %3998 = vmatprep.subr.mxu0 %v4395_v37  ;;  %v2957_v46 = vpop.permute.xlu0 %2956 }
 0xd2c   : > { %3991 = vmatmul.mubr.msk.f32.vlgmr.msra.gmra.mrb[18].mxu0 %vm723_vm0, %v2635_v39 }
 0xd2d   : > { %3999 = vmatpush3.msra.mxu0 %v2855_v35  ;;  %4000 = vmatprep.mubr.msk.f32.mxu0 %vm4394_vm4, %v4395_v37 }
 0xd2e   : > { %4008 = vmatprep.subr.mxu0 %v4395_v37  ;;  %v3059_v3 = vpop.permute.xlu0 %3058 }
 0xd42   : > { %v2754_v58 = vpop.permute.xlu1 %2753 }
 0xd43   : > { %3996 = vmatmul.mubr.msk.f32.vlgmr.msra.gmra.mrb[20].mxu1 %vm723_vm0, %v2754_v58 }
 0xd44   : > { %4004 = vmatpush3.msra.mxu1 %v2957_v46  ;;  %4005 = vmatprep.mubr.msk.f32.mxu1 %vm4394_vm4, %v4395_v37 }
 0xd45   : > { %4130 = vmatprep.subr.bf16.mxu1 %v4129_v15 }
 0xd46   : > { %v2853_v34 = vpop.permute.xlu1 %2852 }
 0xd47   : > { %4001 = vmatmul.mubr.msk.f32.vlgmr.msra.gmra.mrb[20].mxu0 %vm723_vm0, %v2853_v34 }
 0xd48   : > { %4009 = vmatpush3.msra.mxu0 %v3059_v3  ;;  %4010 = vmatprep.mubr.msk.f32.mxu0 %vm4394_vm4, %v4395_v37 }
 0xd49   : > { %4145 = vmatprep.subr.bf16.mxu0 %v4393_v36 }
 0xd4a   : > { %v2955_v54 = vpop.permute.xlu1 %2954 }
 0xd4b   : > { %4006 = vmatmul.mubr.msk.f32.vlgmr.msra.gmra.mrb[22].mxu1 %vm723_vm0, %v2955_v54 }
 0xd4c   : > { %4132 = vmatpush3.bf16.msra.mxu1 %v4129_v15 }
 0xd4d   : > { %4134 = vmatprep.subr.bf16.mxu1 %v4133_v26 }
 0xd4e   : > { %v3057_v41 = vpop.permute.xlu1 %3056 }
 0xd4f   : > { %4011 = vmatmul.mubr.msk.f32.vlgmr.msra.gmra.mrb[22].mxu0 %vm723_vm0, %v3057_v41 }
 0xd50   : > { %4036 = vmatprep.mubr.msk.f32.mxu0 %vm4394_vm4, %v4395_v37  ;;  %4136 = vmatpush3.bf16.msra.mxu1 %v4133_v26 }
 0xd51   : > { %4138 = vmatprep.subr.bf16.mxu1 %v4137_v18 }
 0xd54   : > { %4140 = vmatpush3.bf16.msra.mxu1 %v4137_v18  ;;  %v3715_v18 = vld [vmem:[%s5270_s2] ss:$0 sm:$0xff] }
 0xd55   : > { %4142 = vmatprep.subr.bf16.mxu1 %v4141_v62 }
 0xd58   : > { %4144 = vmatpush3.bf16.msra.mxu1 %v4141_v62  ;;  %v3306_v62 = vstv %s3305_s6 }
 0xdac   : > { %v2408_v12 = vpop.f32.mrb[16].mxu1 }
 0xdad   : > { %v3977_v13 = vpop.f32.mrb[17].mxu1 }
 0xdf7   : > { %v2608_v16 = vpop.f32.mrb[18].mxu1 }
 0xdf8   : > { %2717 = vrot.lane.b32.xlu1 %v2608_v16, %s4405_s3  ;;  %v3987_v17 = vpop.f32.mrb[19].mxu1 }
 0xdfb   : > { %v2508_v56 = vpop.f32.mrb[16].mxu0 }
 0xdfc   : > { %2713 = vrot.lane.b32.xlu0 %v2508_v56, %s4406_s30  ;;  %v3982_v60 = vpop.f32.mrb[17].mxu0 }
 0xdff   : > { %v2708_v61 = vpop.f32.mrb[18].mxu0 }
 0xe00   : > { %2721 = vrot.lane.b32.xlu1 %v2708_v61, %s4407_s1  ;;  %v3992_v0 = vpop.f32.mrb[19].mxu0 }
 0xe16   : > { %v2823_v10 = vpop.f32.mrb[20].mxu1 }
 0xe17   : > { %v3997_v21 = vpop.f32.mrb[21].mxu1 }
 0xe1a   : > { %v2925_v22 = vpop.f32.mrb[20].mxu0 }
 0xe1b   : > { %3134 = vrot.lane.b32.xlu0 %v2925_v22, %s4406_s30  ;;  %v4002_v23 = vpop.f32.mrb[21].mxu0 }
 0xe1c   : > { %v3716_v23 = vld [vmem:[%s5213_s18] ss:$0 sm:$0xff] }
 0xe1e   : > { %v3027_v24 = vpop.f32.mrb[22].mxu1 }
 0xe1f   : > { %3138 = vrot.lane.b32.xlu0 %v3027_v24, %s4405_s3  ;;  %v4007_v40 = vpop.f32.mrb[23].mxu1 }
 0xe22   : > { %v3129_v27 = vpop.f32.mrb[22].mxu0 }
 0xe23   : > { %3142 = vrot.lane.b32.xlu1 %v3129_v27, %s4407_s1  ;;  %v4012_v47 = vpop.f32.mrb[23].mxu0  ;;  %s3310_s1 = sadd.s32 1, %s4584_s5 }
 0xe24   : > { %s3311_s23 = sld [smem:[#allocation3 + %s3310_s1]] }
 0xe2a   : > { %s3312_s28 = sadd.s32 8, %s3311_s23  ;;  %s698_s23 = sand.u32 1, %s4382_s26  }
 0xe2b   : > { %s3662_s6 = sshll.u32 %s698_s23, 1  ;;  %s3574_s3 = scalar_lea.sflag [#allocation5], %s698_s23 }
 0xe2c   : > { %s700_s25 = scalar_lea.vmem [#allocation4], %s3662_s6 }
 0xe2d   : > { %s3587_s27 = sshll.u32 %s700_s25, 4  ;;  %s5155_s27 = int_to_ptr.vmem [resolvable:$true] %s3587_s27 }
 0xe2e   : > { %s4326_s30 = scalar_lea.vmem %s5155_s27, 32 }
 0xe2f   : > { %p4327_p2 = scmp.ne.s32.totalorder %s5155_s27, %s4326_s30 }
 0xe31   : > { %p4328_p3 = pnand %p4327_p2, %p4570_p10 }
 0xe33   : > { %p4329_p4 = pneg %p4328_p3 }
 0xe6a   : > { %v2718_v29 = vpop.permute.xlu1 %2717 }
 0xe6e   : > { %v2714_v28 = vpop.permute.xlu0 %2713 }
 0xe6f   : > { %v2724_v31 = vsel %vm1478_vm2, %v2408_v12, %v2714_v28  ;;  %v3393_v28 = vld [vmem:[%s5214_s19 + $0x8] sm:$0xff] }
 0xe70   : > { %v2725_v48 = vsel %vm821_vm1, %v2724_v31, %v2718_v29 }
 0xe72   : > { %v2722_v32 = vpop.permute.xlu1 %2721 }
 0xe73   : > { %v2726_v49 = vsel %vm1481_vm3, %v2725_v48, %v2722_v32  ;;  %v4149_v32 = vpack.c.bf16 %v3393_v28, %v3392_v52 }
 0xe74   : > { %4029 = vmatprep.mubr.msk.f32.mxu1 %vm911_vm5, %v2726_v49  ;;  %v3394_v49 = vld [vmem:[%s5214_s19 + $0x10] sm:$0xff] }
 0xe8d   : > { %v3135_v50 = vpop.permute.xlu0 %3134 }
 0xe8e   : > { %v3145_v51 = vsel %vm1478_vm2, %v2823_v10, %v3135_v50  ;;  %v3313_v10 = vstv %s3312_s28  ;;  %v3395_v50 = vld [vmem:[%s5214_s19 + $0x18] sm:$0xff]  ;;  %s3728_s28 = sshll.u32 %s4553_s17, 5  ;;  %s4408_s17 = smov [#allocation4]  }
 0xe8f   : > { %vm3314_vm7 = vcmp.eq.s32.totalorder %v3303_v19, %v3313_v10  ;;  %s5153_s5 = scalar_lea.hbm %s5271_s4, %s3728_s28  ;;  %s4330_s1 = sshll.u32 %s4408_s17, 4  ;;  %s4331_s1 = int_to_ptr.vmem [resolvable:$false] %s4330_s1 }
 0xe90   : > { %v3719_v29 = vsel %vm3314_vm7, 1.0, %v4395_v37  ;;  %s4332_s6 = scalar_lea.vmem %s4331_s1, 64  ;;  %p4333_p5 = scmp.lt.s32.totalorder %s5155_s27, %s4331_s1 }
 0xe91   : > { %v3139_v42 = vpop.permute.xlu0 %3138  ;;  %p4334_p6 = scmp.lt.s32.totalorder %s4332_s6, %s4326_s30 }
 0xe92   : > { %v3146_v1 = vsel %vm821_vm1, %v3145_v51, %v3139_v42  ;;  %v4152_v42 = vpack.c.bf16 %v3395_v50, %v3394_v49 }
 0xe93   : > { %p4335_p7 = por %p4334_p6, %p4333_p5 }
 0xe95   : > { %v3143_v2 = vpop.permute.xlu1 %3142  ;;  %p4336_p8 = pnand %p4335_p7, %p4329_p4 }
 0xe96   : > { %v3147_v4 = vsel %vm1481_vm3, %v3146_v1, %v3143_v2  ;;  %vm3307_vm3 = vcmp.eq.s32.totalorder %v3303_v19, %v3306_v62  ;;  %v3482_v2 = vld [vmem:[%s5216_s21] sm:$0xff] }
 0xe97   : > { %4030 = vmatmul.mubr.msk.f32.vlgmr.msra.gmra.mrb[24].mxu1 %vm911_vm5, %v3147_v4  ;;  %v3718_v47 = vsel %vm3307_vm3, 1.0, %v4395_v37  ;;  %v3483_v4 = vld [vmem:[%s5216_s21 + $0x8] sm:$0xff] }
 0xe98   : > { %v3318_v48 = vsel %vm3317_vm8, %v3718_v47, %v3719_v29 }
 0xf6a   : > { %v4031_v43 = vpop.f32.mrb[24].mxu1 }
 0xf6b   : > { %v3241_v44 = vadd.f32 %v4031_v43, %v3710_v33  ;;  %v3235_v5 = vpop.f32.mrb[25].mxu1 }
 0xf6c   : > { %v3236_v6 = vadd.f32 %v3710_v33, %v3235_v5  ;;  %v4155_v33 = vpack.c.bf16 %v3483_v4, %v3482_v2 }
 0xf6d   : > { %v3247_v7 = vmin.f32 %v3241_v44, 0.0  ;;  %vm3245_vm0 = vcmp.gt.f32.partialorder %v3241_v44, 0.0 }
 0xf6e   : > { %v3246_v8 = vmin.f32 %v3236_v6, 0.0  ;;  %vm3244_vm5 = vcmp.gt.f32.partialorder %v3236_v6, 0.0 }
 0xf6f   : > { %v3250_v45 = vmul.f32 1.442695, %v3247_v7 }
 0xf70   : > { %v3248_v9 = vmul.f32 1.442695, %v3246_v8 }
 0xf71   : > { %4302 = vpow2.f32 %v3250_v45 }
 0xf72   : > { %4304 = vpow2.f32 %v3248_v9  ;;  %v3724_v9 = vld [vmem:[%s5217_s22] ss:$0 sm:$0xff] }
 0xf7b   : > { %v4303_v11 = vpop.eup %4302 }
 0xf7c   : > { %v4305_v38 = vpop.eup %4304  ;;  %v3714_v39 = vadd.f32 -1.0, %v4303_v11 }
 0xf7d   : > { %v3713_v35 = vadd.f32 -1.0, %v4305_v38 }
 0xf7e   : > { %v3255_v46 = vsel %vm3245_vm0, %v3241_v44, %v3714_v39 }
 0xf7f   : > { %v3257_v58 = vadd.f32 %v3255_v46, %v4905_v30  ;;  %v3254_v34 = vsel %vm3244_vm5, %v3236_v6, %v3713_v35 }
 0xf80   : > { %v3256_v3 = vadd.f32 %v3254_v34, %v4895_v25 }
 0xf81   : > { %v3263_v54 = vsel %vm821_vm1, %v3257_v58, 0.0 }
 0xf82   : > { %3264 = vadd.xlane.f32.xlu1 %v3263_v54  ;;  %v3260_v41 = vsel %vm821_vm1, %v3256_v3, 0.0 }
 0xf83   : > { %3261 = vadd.xlane.f32.xlu0 %v3260_v41 }
0x100f   : > { %v3265_v12 = vpop.xlane.xlu1 %3264 }
0x1010   : > { %v3267_v13 = vmul.f32 0.03125, %v3265_v12  ;;  %v3262_v14 = vpop.xlane.xlu0 %3261 }
0x1011   : > { %v3266_v55 = vmul.f32 0.03125, %v3262_v14 }
0x1012   : > { %v3269_v59 = vsub.f32 %v3257_v58, %v3267_v13 }
0x1013   : > { %v3268_v15 = vsub.f32 %v3256_v3, %v3266_v55 }
0x1014   : > { %v3271_v26 = vmul.f32 %v3269_v59, %v3269_v59 }
0x1015   : > { %v3270_v63 = vmul.f32 %v3268_v15, %v3268_v15 }
0x1016   : > { %v3275_v25 = vsel %vm821_vm1, %v3271_v26, 0.0 }
0x1017   : > { %v3272_v30 = vsel %vm821_vm1, %v3270_v63, 0.0 }
0x1018   : > { %3273 = vadd.xlane.f32.xlu0 %v3272_v30 }
0x101c   : > { %3276 = vadd.xlane.f32.xlu0 %v3275_v25 }
0x10a5   : > { %v3274_v16 = vpop.xlane.xlu0 %3273 }
0x10a6   : > { %v3278_v17 = vmul.f32 0.03125, %v3274_v16 }
0x10a8   : > { %v3280_v56 = vadd.f32 1e-05, %v3278_v17 }
0x10a9   : > { %v3277_v60 = vpop.xlane.xlu0 %3276 }
0x10aa   : > { %4306 = vrsqrt.f32 %v3280_v56  ;;  %v3279_v61 = vmul.f32 0.03125, %v3277_v60 }
0x10ac   : > { %v3281_v0 = vadd.f32 1e-05, %v3279_v61 }
0x10ae   : > { %4308 = vrsqrt.f32 %v3281_v0 }
0x10b4   : > { %v4307_v53 = vpop.eup %4306 }
0x10b5   : > { %v3284_v57 = vmul.f32 %v4307_v53, %v3268_v15 }
0x10b7   : > { %v3292_v22 = vmul.f32 %v3715_v18, %v3284_v57 }
0x10b8   : > { %v4309_v20 = vpop.eup %4308 }
0x10b9   : > { %v3285_v21 = vmul.f32 %v4309_v20, %v3269_v59  ;;  %v3300_v40 = vadd.f32 %v3716_v23, %v3292_v22 }
0x10bb   : > { %v3293_v24 = vmul.f32 %v3715_v18, %v3285_v21 }
0x10bd   : > { %v3301_v27 = vadd.f32 %v3716_v23, %v3293_v24 }
0x10bf   : > { %v4146_v31 = vpack.c.bf16 %v3301_v27, %v3300_v40 }
0x10c1   : > { %4147 = vmatpush3.bf16.msra.mxu0 %v4146_v31 }
0x10c2   : > { %4148 = vmatprep.subr.bf16.mxu0 %v4393_v36 }
0x10c4   : > { %4037 = vmatmul.mubr.msk.f32.vlgmr.msra.gmra.mrb[24].mxu0 %vm1478_vm2, %v3318_v48 }
0x10c5   : > { %4150 = vmatpush3.bf16.msra.mxu0 %v4149_v32  ;;  %4047 = vmatprep.mubr.msk.f32.mxu0 %vm4394_vm4, %v4395_v37 }
0x10c6   : > { %4151 = vmatprep.subr.bf16.mxu0 %v4393_v36 }
0x10c9   : > { %4153 = vmatpush3.bf16.msra.mxu0 %v4152_v42 }
0x10ca   : > { %4154 = vmatprep.subr.bf16.mxu0 %v4393_v36  ;;  %v3721_v36 = vld [vmem:[%s5215_s20] ss:$0 sm:$0xff] }
0x1197   : > { %v3388_v51 = vpop.f32.mrb[24].mxu0 }
0x1198   : > { %v4038_v1 = vpop.f32.mrb[25].mxu0  ;;  %4048 = vmatmul.mubr.msk.f32.vlgmr.msra.gmra.mrb[26].mxu0 %vm821_vm1, %v3388_v51 }
0x1199   : > { %4054 = vmatprep.mubr.msk.f32.mxu0 %vm4394_vm4, %v4395_v37  ;;  %4156 = vmatpush3.bf16.msra.mxu0 %v4155_v33 }
0x126b   : > { %v3472_v43 = vpop.f32.mrb[26].mxu0 }
0x126c   : > { %v3473_v44 = vadd.f32 %v3721_v36, %v3472_v43  ;;  %v4049_v5 = vpop.f32.mrb[27].mxu0 }
0x126e   : > { %v3477_v6 = vmin.f32 %v3473_v44, 0.0  ;;  %vm3476_vm1 = vcmp.gt.f32.partialorder %v3473_v44, 0.0 }
0x1270   : > { %v3478_v37 = vmul.f32 1.442695, %v3477_v6 }
0x1272   : > { %4310 = vpow2.f32 %v3478_v37 }
0x127c   : > { %v4311_v7 = vpop.eup %4310 }
0x127d   : > { %v3723_v8 = vadd.f32 -1.0, %v4311_v7 }
0x127f   : > { %v3481_v45 = vsel %vm3476_vm1, %v3473_v44, %v3723_v8 }
0x1280   : > { %4055 = vmatmul.mubr.msk.f32.vlgmr.msra.gmra.mrb[28].mxu0 %vm1478_vm2, %v3481_v45  ;;  %vm3571_vm2 = vcmask 58368  }
0x1353   : > { %v3560_v11 = vpop.f32.mrb[28].mxu0 }
0x1354   : > { %v3561_v38 = vadd.f32 %v3724_v9, %v3560_v11  ;;  %v4056_v39 = vpop.f32.mrb[29].mxu0 }
0x1356   : > { %v3565_v35 = vmin.f32 %v3561_v38, 0.0  ;;  %vm3564_vm4 = vcmp.gt.f32.partialorder %v3561_v38, 0.0 }
0x1358   : > { %v3566_v46 = vmul.f32 1.442695, %v3565_v35 }
0x135a   : > { %4312 = vpow2.f32 %v3566_v46 }
0x1364   : > { %v4313_v58 = vpop.eup %4312 }
0x1365   : > { %v3726_v34 = vadd.f32 -1.0, %v4313_v58 }
0x1367   : > { %v3569_v3 = vsel %vm3564_vm4, %v3561_v38, %v3726_v34 }
0x1368   : > { %v3570_v54 = vmul.f32 1999853.4, %v3569_v3 }
0x136a   : > { %3572 = vst.msk [vmem:[%s700_s25] sm:$0x3] %vm3571_vm2, %v3570_v54 }
0x136b   : > { %4339 = shalt.err (!%p4336_p8)
}
0x136c   : > { %s4340_s23 = scalar_lea.hbm %s5153_s5, 32  ;;  %s4344_s2 = scalar_lea.hbm %s5271_s4, 64 }
0x136d   : > { %p4341_p9 = scmp.ne.s32.totalorder %s5153_s5, %s4340_s23  ;;  %p4345_p0 = scmp.lt.u32.totalorder %s5153_s5, %s5271_s4 }
0x136e   : > { %p4346_p1 = scmp.lt.u32.totalorder %s4344_s2, %s4340_s23  ;;  %p4348_p3 = scmp.lt.u32.totalorder %s4340_s23, %s5153_s5 }
0x136f   : > { %p4342_p12 = pnand %p4341_p9, %p4570_p10 }
0x1370   : > { %p4347_p2 = por %p4346_p1, %p4345_p0 }
0x1371   : > { %p4343_p13 = pneg %p4342_p12 }
0x1372   : > { %p4349_p4 = por %p4348_p3, %p4347_p2 }
0x1374   : > { %p4350_p5 = pnand %p4349_p4, %p4343_p13 }
0x1376   : > { %4353 = shalt.err (!%p4350_p5)
}
0x1377   : > { %4157 = dma.vmem_to_hbm [thread:$0]  (%p4570_p10), %s5155_s27, 32, %s5153_s5, %s3574_s3  }
0x1378 PF: > { %s5272_s30 = sld [smem:[#allocation10_spill]]  ;;  %s5273_s1 = sld [smem:[#allocation8_spill]] }
0x137e   : > { %p4163_p6 = scmp.ge.s32.totalorder %s5272_s30, 2  ;;  %s3599_s28 = sand.u32 1, %s5273_s1  }
0x137f   : > { %s3600_s25 = scalar_lea.sflag [#allocation5], %s3599_s28 }
0x1380   : > { %p4160_p7 = pnand %p4163_p6, %p4574_p11 }
0x1382   : > { %4373 = dma.done.wait (!%p4160_p7), %s3600_s25, 32  }
0x1383   : > { %4375 = vsyncadd (!%p4160_p7), %s3600_s25, 4294967264  ;;  %s5275_s6 = sld [smem:[#allocation11_spill]]  ;;  %s5276_s23 = sld [smem:[#allocation9_spill]] }
0x1384   : > { %s5277_s2 = sld [smem:[#allocation12_spill]]  ;;  %s5278_s1 = smov %s4382_s26 }
0x1389   : > { %p39_p8 = scmp.ge.s32.totalorder %s5275_s6, 4   ;;  %s5279_s26 = smov %s5276_s23 }
0x138b   :  { %41 = sbr.rel (!%p39_p8) target bundleno = 27 (0x1b), region = 147 }
0x1392   :  { %3605 = vsyncpa [#allocation5], 1 }
0x1393   :  { %3607 = vsyncpa [#allocation5 + $0x1], 1 }

</bundles_post_ra>
